<compile_context>
chip_gen: v6e
topology: v6e:2x2x1
jax: 0.10.0
libtpu: 0.0.40
codegen_flags: <defaults>
</compile_context>

<pallas_src>
import jax
import jax.numpy as jnp
from jax.experimental import pallas as pl
from jax.experimental.pallas import tpu as pltpu

EPS = 1e-5
TAG_K = 3      # PyG TAGConv default number of hops
N_OPS = 5      # [A_hat, A_hat^2, A_hat^3, A, A_mean]


# ---------------------------------------------------------------------------
# Pallas kernel (factory closes over static config)
# ---------------------------------------------------------------------------
def _make_kernel(hid, proj_first):
    H = hid
    f32 = jnp.float32

    def kernel(x_ref, s_ref, deg_ref, pool_ref, ef_ref,
               wself_ref, wop_ref, gw_ref, v_ref,
               fw1h_ref, fw1e_ref, fb1_ref, fw3_ref, fb3_ref,
               out_ref, x_scr, zo_scr):
        b = pl.program_id(0)                 # inception block index (0..2)
        k = pl.program_id(1)                 # graph operator index (0..4)
        last_op = pl.num_programs(1) - 1
        last_blk = pl.num_programs(0) - 1

        # first grid step: load (zero-padded) node features into persistent state
        @pl.when((b == 0) & (k == 0))
        def _():
            x_scr[...] = x_ref[...]

        # block start: zo <- x @ Wself  (self / sub / skip terms, one fused dot)
        @pl.when(k == 0)
        def _():
            zo_scr[...] = jnp.dot(x_scr[...].astype(wself_ref.dtype),
                                  wself_ref[...], preferred_element_type=f32)

        # one graph operator per step; its (N,N) tile was DMA'd while the previous
        # step computed.  Accumulate straight into zo — no sx / z_buf round trip.
        prop = jnp.dot(s_ref[...], x_scr[...].astype(s_ref.dtype),
                       preferred_element_type=f32)
        zo_scr[...] += jnp.dot(prop.astype(wop_ref.dtype), wop_ref[...],
                               preferred_element_type=f32)

        # last operator of the block: branch epilogues + BN + ReLU + gated skip
        @pl.when(k == last_op)
        def _():
            zo = zo_scr[...]                    # (N, 5H) f32
            v = v_ref[...]                      # (11, H) f32, sublane rows
            deg = deg_ref[...]                  # (N, 1)

            def bn_relu(h, j):
                mu = jnp.mean(h, axis=0, keepdims=True)
                d = h - mu
                var = jnp.mean(d * d, axis=0, keepdims=True)   # two-pass, >= 0
                return jnp.maximum(
                    d * jax.lax.rsqrt(var + EPS) * v[4 + j:5 + j] + v[7 + j:8 + j],
                    0.0)

            # branch pre-activations (LEConv uses A @ b1 == deg * b1, exact)
            h_tag = zo[:, 0:H] + v[1:2]
            h_le = (zo[:, H:2 * H] - deg * zo[:, 2 * H:3 * H]
                    + deg * v[0:1] + v[2:3])
            h_sg = zo[:, 3 * H:4 * H] + v[3:4]
            h = bn_relu(h_tag, 0) + bn_relu(h_le, 1) + bn_relu(h_sg, 2)

            # GatedSkipConnection: z*h + (1-z)*in_x ; projection only in block 1
            x_cur = x_scr[...]
            if proj_first:
                in_x = jnp.where(b == 0, zo[:, 4 * H:5 * H], x_cur)
            else:
                in_x = x_cur

            gw = gw_ref[...]                    # (2H, H): [ciW ; coW]
            zg = jax.nn.sigmoid(
                jnp.dot(in_x.astype(gw_ref.dtype), gw[0:H],
                        preferred_element_type=f32)
                + jnp.dot(h.astype(gw_ref.dtype), gw[H:2 * H],
                          preferred_element_type=f32)
                + v[10:11])
            x_new = zg * h + (1.0 - zg) * in_x
            x_scr[...] = x_new

            # last block: global mean pool + MLP head (only HBM write of the kernel)
            @pl.when(b == last_blk)
            def _():
                pooled = jnp.dot(pool_ref[...], x_new, preferred_element_type=f32)
                hg = jnp.maximum(
                    jnp.dot(pooled, fw1h_ref[...], preferred_element_type=f32)
                    + jnp.dot(ef_ref[...], fw1e_ref[...], preferred_element_type=f32)
                    + fb1_ref[...], 0.0)
                out_ref[...] = (jnp.dot(hg, fw3_ref[...], preferred_element_type=f32)
                                + fb3_ref[...])

    return kernel


# ---------------------------------------------------------------------------
# pallas_call wrapper
# ---------------------------------------------------------------------------
def lw_incept_forward(x_pad, S, deg, P, eF, Wself, Wop, GW, V, head_p,
                      *, hid, proj_first):
    f32 = jnp.float32
    N, H = x_pad.shape
    NB, NOP, _, OUTW = Wop.shape
    G = P.shape[0]
    EX = eF.shape[1]
    out_dim = head_p["w3"].shape[1]

    kernel = _make_kernel(hid, proj_first)

    def full(shape):
        n = len(shape)
        return pl.BlockSpec(shape, lambda b, k: (0,) * n)

    in_specs = [
        full((N, H)),                                              # x_pad
        pl.BlockSpec((N, N), lambda b, k: (k, 0)),                 # S operator tile
        full((N, 1)),                                              # deg
        full((G, N)),                                              # pooling matrix
        full((G, EX)),                                             # eFeature
        pl.BlockSpec((None, H, OUTW), lambda b, k: (b, 0, 0)),     # Wself
        pl.BlockSpec((None, None, H, OUTW), lambda b, k: (b, k, 0, 0)),  # Wop
        pl.BlockSpec((None, 2 * H, H), lambda b, k: (b, 0, 0)),    # gate weights
        pl.BlockSpec((None, 11, H), lambda b, k: (b, 0, 0)),       # packed vectors
        full((H, H)), full((EX, H)), full((1, H)),                 # fc1
        full((H, out_dim)), full((1, out_dim)),                    # fc3
    ]
    out_spec = pl.BlockSpec((G, out_dim), lambda b, k: (0, 0))

    # explicit VMEM budget (defaults: 16 MiB v5e / 32 MiB v6e,v7x) with headroom,
    # capped well below v7x's 64 MiB physical VMEM.
    isz = lambda dt: jnp.dtype(dt).itemsize
    in_bytes = (N * H * 4 + N * N * isz(S.dtype) + N * 4 + G * N * 4 + G * EX * 4
                + H * OUTW * isz(Wself.dtype) + H * OUTW * isz(Wop.dtype)
                + 2 * H * H * isz(GW.dtype) + 11 * H * 4
                + H * H * 4 + EX * H * 4 + H * 4 + H * out_dim * 4 + out_dim * 4)
    scratch_bytes = N * H * 4 + N * OUTW * 4
    est = 2 * in_bytes + 2 * G * out_dim * 4 + scratch_bytes
    vmem_limit = int(min(max(est + (8 << 20), 32 << 20), 48 << 20))

    flops = (NB * NOP * 2 * N * N * H                     # graph propagations
             + NB * (NOP + 1) * 2 * N * H * OUTW          # packed block weights
             + NB * 2 * N * 2 * H * H                     # gate matmuls
             + 2 * G * N * H + 2 * G * H * H + 2 * G * EX * H + 2 * G * H * out_dim)
    bytes_accessed = NB * NOP * N * N * isz(S.dtype) + in_bytes + G * out_dim * 4
    cost = pl.CostEstimate(flops=int(flops),
                           transcendentals=int(NB * (N * H + 3 * H)),
                           bytes_accessed=int(bytes_accessed))

    return pl.pallas_call(
        kernel,
        out_shape=jax.ShapeDtypeStruct((G, out_dim), f32),
        grid_spec=pltpu.PrefetchScalarGridSpec(
            num_scalar_prefetch=0,
            grid=(NB, NOP),
            in_specs=in_specs,
            out_specs=out_spec,
            scratch_shapes=[pltpu.VMEM((N, H), f32),       # persistent x_cur
                            pltpu.VMEM((N, OUTW), f32)]),  # per-block accumulator
        compiler_params=pltpu.CompilerParams(
            # both grid axes carry sequential dependencies (block chaining,
            # zo accumulation, global BatchNorm) -> must stay "arbitrary"
            dimension_semantics=("arbitrary", "arbitrary"),
            vmem_limit_bytes=vmem_limit),
        cost_estimate=cost,
    )(x_pad, S, deg, P, eF, Wself, Wop, GW, V,
      head_p["w1h"], head_p["w1e"], head_p["b1"], head_p["w3"], head_p["b3"])


# ---------------------------------------------------------------------------
# deterministic parameter init (original per-module weights)
# ---------------------------------------------------------------------------
def init_linear(key, in_dim, out_dim, bias=True, scale=0.1):
    kw, kb = jax.random.split(key)
    w = scale * jax.random.normal(kw, (in_dim, out_dim), jnp.float32)
    b = scale * jax.random.normal(kb, (1, out_dim), jnp.float32) if bias else None
    return w, b


def init_block_params(key, in_dim, hid):
    ks = jax.random.split(key, 10)
    p = {}
    p["tagW"] = 0.1 * jax.random.normal(ks[0], (TAG_K + 1, in_dim, hid), jnp.float32)
    p["tagB"] = 0.1 * jax.random.normal(ks[1], (1, hid), jnp.float32)
    p["leW1"], p["leB1"] = init_linear(ks[2], in_dim, hid, bias=True)
    p["leW2"], _ = init_linear(ks[3], in_dim, hid, bias=False)
    p["leW3"], p["leB3"] = init_linear(ks[4], in_dim, hid, bias=True)
    p["sgWl"], p["sgBl"] = init_linear(ks[5], in_dim, hid, bias=True)
    p["sgWr"], _ = init_linear(ks[6], in_dim, hid, bias=False)
    p["gamma"] = jnp.ones((3, hid), jnp.float32)   # BatchNorm default init
    p["beta"] = jnp.zeros((3, hid), jnp.float32)
    if in_dim != hid:
        p["skW"], _ = init_linear(ks[7], in_dim, hid, bias=False)
    else:
        p["skW"] = jnp.eye(hid, dtype=jnp.float32)  # unused (projection skipped)
    p["ciW"], p["ciB"] = init_linear(ks[8], hid, hid, bias=True)
    p["coW"], p["coB"] = init_linear(ks[9], hid, hid, bias=True)
    return p


# ---------------------------------------------------------------------------
# glue: pack per-block weights for the tiled-by-operator kernel
# ---------------------------------------------------------------------------
def build_packed_params(params_list, hid, in_dim):
    H = hid
    f32 = jnp.float32

    def padw(w):  # zero-pad input dim to H (matches zero-padded node features)
        if w.shape[0] == H:
            return w
        return jnp.concatenate(
            [w, jnp.zeros((H - w.shape[0], w.shape[1]), f32)], axis=0)

    zero = jnp.zeros((H, H), f32)
    Wself_l, Wop_l, GW_l, V_l = [], [], [], []
    for bi, p in enumerate(params_list):
        has_proj = (bi == 0 and in_dim != hid)
        skcol = padw(p["skW"]) if has_proj else zero
        # output column blocks: [tag | le_main | le_sub | sage | skip]
        Wself_l.append(jnp.concatenate(
            [padw(p["tagW"][0]), padw(p["leW3"]), padw(p["leW2"]),
             padw(p["sgWr"]), skcol], axis=1))                      # (H, 5H)
        wops = [jnp.concatenate([padw(p["tagW"][k]), zero, zero, zero, zero], 1)
                for k in (1, 2, 3)]                                 # A_hat^k -> tag
        wops.append(jnp.concatenate([zero, padw(p["leW1"]), zero, zero, zero], 1))  # A
        wops.append(jnp.concatenate([zero, zero, zero, padw(p["sgWl"]), zero], 1))  # A_mean
        Wop_l.append(jnp.stack(wops, 0))                            # (5, H, 5H)
        GW_l.append(jnp.concatenate([p["ciW"], p["coW"]], 0))       # (2H, H)
        V_l.append(jnp.concatenate(
            [p["leB1"], p["tagB"], p["leB3"], p["sgBl"],
             p["gamma"], p["beta"], p["ciB"] + p["coB"]], axis=0))  # (11, H)
    return (jnp.stack(Wself_l), jnp.stack(Wop_l),
            jnp.stack(GW_l), jnp.stack(V_l))


# ---------------------------------------------------------------------------
# pure-JAX reference (original per-module formulation)
# ---------------------------------------------------------------------------
def ref_bn_relu(h, gamma, beta):
    mu = h.mean(0, keepdims=True)
    var = ((h - mu) ** 2).mean(0, keepdims=True)
    return jnp.maximum((h - mu) / jnp.sqrt(var + EPS) * gamma + beta, 0.0)


def ref_block(x, ah, a, am, deg, p):
    h_tag = x @ p["tagW"][0]
    xk = x
    for k in range(1, TAG_K + 1):
        xk = ah @ xk
        h_tag = h_tag + xk @ p["tagW"][k]
    h_tag = h_tag + p["tagB"]
    h1 = ref_bn_relu(h_tag, p["gamma"][0:1], p["beta"][0:1])
    h_le = (a @ (x @ p["leW1"] + p["leB1"]) - deg * (x @ p["leW2"])
            + x @ p["leW3"] + p["leB3"])
    h2 = ref_bn_relu(h_le, p["gamma"][1:2], p["beta"][1:2])
    h_sg = (am @ x) @ p["sgWl"] + p["sgBl"] + x @ p["sgWr"]
    h3 = ref_bn_relu(h_sg, p["gamma"][2:3], p["beta"][2:3])
    h = h1 + h2 + h3
    in_x = x @ p["skW"] if x.shape[1] != h.shape[1] else x
    z = jax.nn.sigmoid(in_x @ p["ciW"] + p["ciB"] + h @ p["coW"] + p["coB"])
    return z * h + (1.0 - z) * in_x


# ---------------------------------------------------------------------------
if __name__ == "__main__":
    N_PER_G, G = 8, 2
    N = N_PER_G * G
    IN_DIM, HID, OUT_DIM, EX = 8, 32, 4, 20

    key = jax.random.PRNGKey(0)
    kx, ke, kp = jax.random.split(key, 3)

    x = jax.random.normal(kx, (N, IN_DIM), jnp.float32)        # g.x
    eF = jax.random.normal(ke, (G, EX), jnp.float32)           # g.eFeature

    # graph: two independent undirected 8-node rings (edge_index equivalent)
    src, dst = [], []
    for g in range(G):
        base = g * N_PER_G
        for i in range(N_PER_G):
            a_, b_ = base + i, base + (i + 1) % N_PER_G
            src += [a_, b_]
            dst += [b_, a_]
    src = jnp.array(src)
    dst = jnp.array(dst)

    A = jnp.zeros((N, N), jnp.float32).at[dst, src].add(1.0)   # A[i,j]=1 iff edge j->i
    deg = A.sum(axis=1, keepdims=True)
    dinv_sqrt = jnp.where(deg > 0, 1.0 / jnp.sqrt(deg), 0.0)
    A_hat = dinv_sqrt * A * dinv_sqrt.reshape(1, N)
    A_mean = A / jnp.maximum(deg, 1.0)
    A_hat2 = A_hat @ A_hat
    A_hat3 = A_hat2 @ A_hat
    S_f32 = jnp.concatenate([A_hat, A_hat2, A_hat3, A, A_mean], axis=0)  # (5N, N)

    batch = jnp.repeat(jnp.arange(G), N_PER_G)
    P = jax.nn.one_hot(batch, G, dtype=jnp.float32).T / float(N_PER_G)

    k1, k2, k3, k4 = jax.random.split(kp, 4)
    params = [init_block_params(k1, IN_DIM, HID),
              init_block_params(k2, HID, HID),
              init_block_params(k3, HID, HID)]
    kh1, kh2 = jax.random.split(k4)
    w1, b1 = init_linear(kh1, HID + EX, HID, bias=True)
    w3, b3 = init_linear(kh2, HID, OUT_DIM, bias=True)
    head_p = {"w1h": w1[:HID], "w1e": w1[HID:], "b1": b1, "w3": w3, "b3": b3}

    proj_first = IN_DIM != HID
    Wself, Wop, GW, V = build_packed_params(params, HID, IN_DIM)

    if IN_DIM < HID:
        x_pad = jnp.concatenate([x, jnp.zeros((N, HID - IN_DIM), jnp.float32)], 1)
    else:
        x_pad = x

    # pure-JAX reference
    hr = x
    for p in params:
        hr = ref_block(hr, A_hat, A, A_mean, deg, p)
    pooled = P @ hr
    hg = jnp.maximum(pooled @ head_p["w1h"] + eF @ head_p["w1e"] + head_p["b1"], 0.0)
    ref = hg @ head_p["w3"] + head_p["b3"]

    # --- exact path: f32 operator stack + weights -> tight check ---
    out_f32 = lw_incept_forward(x_pad, S_f32, deg, P, eF, Wself, Wop, GW, V,
                                head_p, hid=HID, proj_first=proj_first)
    out_f32 = jax.block_until_ready(out_f32)
    assert out_f32.shape == (G, OUT_DIM)
    assert jnp.allclose(out_f32, ref, rtol=1e-3, atol=1e-3)

    # --- fast path: bf16 operator stack + packed weights, f32 accumulation ---
    out_bf16 = lw_incept_forward(
        x_pad, S_f32.astype(jnp.bfloat16), deg, P, eF,
        Wself.astype(jnp.bfloat16), Wop.astype(jnp.bfloat16),
        GW.astype(jnp.bfloat16), V, head_p, hid=HID, proj_first=proj_first)
    out_bf16 = jax.block_until_ready(out_bf16)
    assert bool(jnp.all(jnp.isfinite(out_bf16)))
    assert jnp.allclose(out_bf16, ref, rtol=1e-1, atol=1e-1)

    print("KERNEL_OK")
</pallas_src>

<mosaic_0001>
module attributes {stable_mosaic.version = 11 : i64} {
  func.func @kernel(%arg0: i32, %arg1: i32, %arg2: memref<16x32xf32, #tpu.memory_space<vmem>>, %arg3: memref<16x16xf32, #tpu.memory_space<vmem>>, %arg4: memref<16x1xf32, #tpu.memory_space<vmem>>, %arg5: memref<2x16xf32, #tpu.memory_space<vmem>>, %arg6: memref<2x20xf32, #tpu.memory_space<vmem>>, %arg7: memref<1x32x160xf32, #tpu.memory_space<vmem>>, %arg8: memref<1x1x32x160xf32, #tpu.memory_space<vmem>>, %arg9: memref<1x64x32xf32, #tpu.memory_space<vmem>>, %arg10: memref<1x11x32xf32, #tpu.memory_space<vmem>>, %arg11: memref<32x32xf32, #tpu.memory_space<vmem>>, %arg12: memref<20x32xf32, #tpu.memory_space<vmem>>, %arg13: memref<1x32xf32, #tpu.memory_space<vmem>>, %arg14: memref<32x4xf32, #tpu.memory_space<vmem>>, %arg15: memref<1x4xf32, #tpu.memory_space<vmem>>, %arg16: memref<2x4xf32, #tpu.memory_space<vmem>>, %arg17: memref<16x32xf32, #tpu.memory_space<vmem>>, %arg18: memref<16x160xf32, #tpu.memory_space<vmem>>) attributes {dimension_semantics = [#tpu.dimension_semantics<arbitrary>, #tpu.dimension_semantics<arbitrary>], iteration_bounds = array<i64: 3, 5>, scalar_prefetch = 0 : i64, scratch_operands = 2 : i64, tpu.core_type = #tpu.core_type<tc>, window_params = [{pipeline_mode = #tpu.pipeline_mode<synchronous>, transform_indices = @transform_0, window_bounds = array<i64: 16, 32>}, {transform_indices = @transform_1, window_bounds = array<i64: 16, 16>}, {pipeline_mode = #tpu.pipeline_mode<synchronous>, transform_indices = @transform_2, window_bounds = array<i64: 16, 1>}, {pipeline_mode = #tpu.pipeline_mode<synchronous>, transform_indices = @transform_3, window_bounds = array<i64: 2, 16>}, {pipeline_mode = #tpu.pipeline_mode<synchronous>, transform_indices = @transform_4, window_bounds = array<i64: 2, 20>}, {transform_indices = @transform_5, window_bounds = array<i64: 1, 32, 160>}, {transform_indices = @transform_6, window_bounds = array<i64: 1, 1, 32, 160>}, {transform_indices = @transform_7, window_bounds = array<i64: 1, 64, 32>}, {transform_indices = @transform_8, window_bounds = array<i64: 1, 11, 32>}, {pipeline_mode = #tpu.pipeline_mode<synchronous>, transform_indices = @transform_9, window_bounds = array<i64: 32, 32>}, {pipeline_mode = #tpu.pipeline_mode<synchronous>, transform_indices = @transform_10, window_bounds = array<i64: 20, 32>}, {pipeline_mode = #tpu.pipeline_mode<synchronous>, transform_indices = @transform_11, window_bounds = array<i64: 1, 32>}, {pipeline_mode = #tpu.pipeline_mode<synchronous>, transform_indices = @transform_12, window_bounds = array<i64: 32, 4>}, {pipeline_mode = #tpu.pipeline_mode<synchronous>, transform_indices = @transform_13, window_bounds = array<i64: 1, 4>}, {pipeline_mode = #tpu.pipeline_mode<synchronous>, transform_indices = @transform_14, window_bounds = array<i64: 2, 4>}]} {
    %c0_i32 = arith.constant 0 : i32
    %0 = arith.cmpi eq, %arg0, %c0_i32 : i32
    %c0_i32_0 = arith.constant 0 : i32
    %1 = arith.cmpi eq, %arg1, %c0_i32_0 : i32
    %2 = arith.andi %0, %1 : i1
    %3 = arith.extui %2 : i1 to i32
    %c0_i32_1 = arith.constant 0 : i32
    %4 = arith.cmpi ne, %3, %c0_i32_1 : i32
    scf.if %4 {
      %c0_17 = arith.constant 0 : index
      %c0_18 = arith.constant 0 : index
      %20 = vector.load %arg2[%c0_17, %c0_18] : memref<16x32xf32, #tpu.memory_space<vmem>>, vector<16x32xf32>
      %c0_19 = arith.constant 0 : index
      %c0_20 = arith.constant 0 : index
      %21 = vector.load %arg17[%c0_19, %c0_20] : memref<16x32xf32, #tpu.memory_space<vmem>>, vector<16x32xf32>
      tpu.vector_store %arg17[%c0_19, %c0_20], %20 {strides = array<i32>} : memref<16x32xf32, #tpu.memory_space<vmem>>, vector<16x32xf32>,
    } else {
    }
    %c0_i32_2 = arith.constant 0 : i32
    %5 = arith.cmpi eq, %arg1, %c0_i32_2 : i32
    %6 = arith.extui %5 : i1 to i32
    %c0_i32_3 = arith.constant 0 : i32
    %7 = arith.cmpi ne, %6, %c0_i32_3 : i32
    scf.if %7 {
      %c0_17 = arith.constant 0 : index
      %c0_18 = arith.constant 0 : index
      %20 = vector.load %arg17[%c0_17, %c0_18] : memref<16x32xf32, #tpu.memory_space<vmem>>, vector<16x32xf32>
      %c0_19 = arith.constant 0 : index
      %c0_20 = arith.constant 0 : index
      %c0_21 = arith.constant 0 : index
      %21 = vector.load %arg7[%c0_19, %c0_20, %c0_21] : memref<1x32x160xf32, #tpu.memory_space<vmem>>, vector<1x32x160xf32>
      %22 = vector.shape_cast %21 : vector<1x32x160xf32> to vector<32x160xf32>
      %cst_22 = arith.constant dense<0.000000e+00> : vector<16x160xf32>
      %23 = tpu.matmul %20, %22, %cst_22 {dimension_numbers = #tpu.dot_dimension_numbers<[1], [0], [0], [1], [0, 0, 1, 1], [], []>} : vector<16x32xf32>, vector<32x160xf32>, vector<16x160xf32> -> vector<16x160xf32>
      %c0_23 = arith.constant 0 : index
      %c0_24 = arith.constant 0 : index
      %24 = vector.load %arg18[%c0_23, %c0_24] : memref<16x160xf32, #tpu.memory_space<vmem>>, vector<16x160xf32>
      tpu.vector_store %arg18[%c0_23, %c0_24], %23 {strides = array<i32>} : memref<16x160xf32, #tpu.memory_space<vmem>>, vector<16x160xf32>,
    } else {
    }
    %c0 = arith.constant 0 : index
    %c0_4 = arith.constant 0 : index
    %8 = vector.load %arg3[%c0, %c0_4] : memref<16x16xf32, #tpu.memory_space<vmem>>, vector<16x16xf32>
    %c0_5 = arith.constant 0 : index
    %c0_6 = arith.constant 0 : index
    %9 = vector.load %arg17[%c0_5, %c0_6] : memref<16x32xf32, #tpu.memory_space<vmem>>, vector<16x32xf32>
    %cst = arith.constant dense<0.000000e+00> : vector<16x32xf32>
    %10 = tpu.matmul %8, %9, %cst {dimension_numbers = #tpu.dot_dimension_numbers<[1], [0], [0], [1], [0, 0, 1, 1], [], []>} : vector<16x16xf32>, vector<16x32xf32>, vector<16x32xf32> -> vector<16x32xf32>
    %c0_7 = arith.constant 0 : index
    %c0_8 = arith.constant 0 : index
    %11 = vector.load %arg18[%c0_7, %c0_8] : memref<16x160xf32, #tpu.memory_space<vmem>>, vector<16x160xf32>
    %c0_9 = arith.constant 0 : index
    %c0_10 = arith.constant 0 : index
    %c0_11 = arith.constant 0 : index
    %c0_12 = arith.constant 0 : index
    %12 = vector.load %arg8[%c0_9, %c0_10, %c0_11, %c0_12] : memref<1x1x32x160xf32, #tpu.memory_space<vmem>>, vector<1x1x32x160xf32>
    %13 = vector.shape_cast %12 : vector<1x1x32x160xf32> to vector<32x160xf32>
    %cst_13 = arith.constant dense<0.000000e+00> : vector<16x160xf32>
    %14 = tpu.matmul %10, %13, %cst_13 {dimension_numbers = #tpu.dot_dimension_numbers<[1], [0], [0], [1], [0, 0, 1, 1], [], []>} : vector<16x32xf32>, vector<32x160xf32>, vector<16x160xf32> -> vector<16x160xf32>
    %15 = arith.addf %11, %14 : vector<16x160xf32>
    %c0_14 = arith.constant 0 : index
    %c0_15 = arith.constant 0 : index
    %16 = vector.load %arg18[%c0_14, %c0_15] : memref<16x160xf32, #tpu.memory_space<vmem>>, vector<16x160xf32>
    tpu.vector_store %arg18[%c0_14, %c0_15], %15 {strides = array<i32>} : memref<16x160xf32, #tpu.memory_space<vmem>>, vector<16x160xf32>,
    %c4_i32 = arith.constant 4 : i32
    %17 = arith.cmpi eq, %arg1, %c4_i32 : i32
    %18 = arith.extui %17 : i1 to i32
    %c0_i32_16 = arith.constant 0 : i32
    %19 = arith.cmpi ne, %18, %c0_i32_16 : i32
    scf.if %19 {
      %c0_17 = arith.constant 0 : index
      %c0_18 = arith.constant 0 : index
      %20 = vector.load %arg18[%c0_17, %c0_18] : memref<16x160xf32, #tpu.memory_space<vmem>>, vector<16x160xf32>
      %c0_19 = arith.constant 0 : index
      %c0_20 = arith.constant 0 : index
      %c0_21 = arith.constant 0 : index
      %21 = vector.load %arg10[%c0_19, %c0_20, %c0_21] : memref<1x11x32xf32, #tpu.memory_space<vmem>>, vector<1x11x32xf32>
      %22 = vector.shape_cast %21 : vector<1x11x32xf32> to vector<11x32xf32>
      %c0_22 = arith.constant 0 : index
      %c0_23 = arith.constant 0 : index
      %23 = vector.load %arg4[%c0_22, %c0_23] : memref<16x1xf32, #tpu.memory_space<vmem>>, vector<16x1xf32>
      %24 = vector.extract_strided_slice %20 {offsets = [0, 0], sizes = [16, 32], strides = [1, 1]} : vector<16x160xf32> to vector<16x32xf32>
      %25 = vector.extract_strided_slice %22 {offsets = [1, 0], sizes = [1, 32], strides = [1, 1]} : vector<11x32xf32> to vector<1x32xf32>
      %26 = vector.broadcast %25 : vector<1x32xf32> to vector<16x32xf32>
      %27 = arith.addf %24, %26 : vector<16x32xf32>
      %28 = vector.extract_strided_slice %20 {offsets = [0, 32], sizes = [16, 32], strides = [1, 1]} : vector<16x160xf32> to vector<16x32xf32>
      %29 = vector.extract_strided_slice %20 {offsets = [0, 64], sizes = [16, 32], strides = [1, 1]} : vector<16x160xf32> to vector<16x32xf32>
      %30 = vector.broadcast %23 : vector<16x1xf32> to vector<16x32xf32>
      %31 = arith.mulf %30, %29 : vector<16x32xf32>
      %32 = arith.subf %28, %31 : vector<16x32xf32>
      %33 = vector.extract_strided_slice %22 {offsets = [0, 0], sizes = [1, 32], strides = [1, 1]} : vector<11x32xf32> to vector<1x32xf32>
      %34 = vector.broadcast %23 : vector<16x1xf32> to vector<16x32xf32>
      %35 = vector.broadcast %33 : vector<1x32xf32> to vector<16x32xf32>
      %36 = arith.mulf %34, %35 : vector<16x32xf32>
      %37 = arith.addf %32, %36 : vector<16x32xf32>
      %38 = vector.extract_strided_slice %22 {offsets = [2, 0], sizes = [1, 32], strides = [1, 1]} : vector<11x32xf32> to vector<1x32xf32>
      %39 = vector.broadcast %38 : vector<1x32xf32> to vector<16x32xf32>
      %40 = arith.addf %37, %39 : vector<16x32xf32>
      %41 = vector.extract_strided_slice %20 {offsets = [0, 96], sizes = [16, 32], strides = [1, 1]} : vector<16x160xf32> to vector<16x32xf32>
      %42 = vector.extract_strided_slice %22 {offsets = [3, 0], sizes = [1, 32], strides = [1, 1]} : vector<11x32xf32> to vector<1x32xf32>
      %43 = vector.broadcast %42 : vector<1x32xf32> to vector<16x32xf32>
      %44 = arith.addf %41, %43 : vector<16x32xf32>
      %cst_24 = arith.constant dense<0.000000e+00> : vector<32xf32>
      %45 = vector.multi_reduction <add>, %27, %cst_24 [0] : vector<16x32xf32> to vector<32xf32>
      %46 = vector.shape_cast %45 : vector<32xf32> to vector<1x32xf32>
      %cst_25 = arith.constant 1.600000e+01 : f32
      %47 = vector.broadcast %cst_25 : f32 to vector<1x32xf32>
      %48 = arith.divf %46, %47 : vector<1x32xf32>
      %49 = vector.broadcast %48 : vector<1x32xf32> to vector<16x32xf32>
      %50 = arith.subf %27, %49 : vector<16x32xf32>
      %51 = arith.mulf %50, %50 : vector<16x32xf32>
      %cst_26 = arith.constant dense<0.000000e+00> : vector<32xf32>
      %52 = vector.multi_reduction <add>, %51, %cst_26 [0] : vector<16x32xf32> to vector<32xf32>
      %53 = vector.shape_cast %52 : vector<32xf32> to vector<1x32xf32>
      %cst_27 = arith.constant 1.600000e+01 : f32
      %54 = vector.broadcast %cst_27 : f32 to vector<1x32xf32>
      %55 = arith.divf %53, %54 : vector<1x32xf32>
      %cst_28 = arith.constant 9.99999974E-6 : f32
      %56 = vector.broadcast %cst_28 : f32 to vector<1x32xf32>
      %57 = arith.addf %55, %56 : vector<1x32xf32>
      %58 = math.rsqrt %57 : vector<1x32xf32>
      %59 = vector.broadcast %58 : vector<1x32xf32> to vector<16x32xf32>
      %60 = arith.mulf %50, %59 : vector<16x32xf32>
      %61 = vector.extract_strided_slice %22 {offsets = [4, 0], sizes = [1, 32], strides = [1, 1]} : vector<11x32xf32> to vector<1x32xf32>
      %62 = vector.broadcast %61 : vector<1x32xf32> to vector<16x32xf32>
      %63 = arith.mulf %60, %62 : vector<16x32xf32>
      %64 = vector.extract_strided_slice %22 {offsets = [7, 0], sizes = [1, 32], strides = [1, 1]} : vector<11x32xf32> to vector<1x32xf32>
      %65 = vector.broadcast %64 : vector<1x32xf32> to vector<16x32xf32>
      %66 = arith.addf %63, %65 : vector<16x32xf32>
      %cst_29 = arith.constant 0.000000e+00 : f32
      %67 = vector.broadcast %cst_29 : f32 to vector<16x32xf32>
      %68 = arith.maximumf %66, %67 : vector<16x32xf32>
      %cst_30 = arith.constant dense<0.000000e+00> : vector<32xf32>
      %69 = vector.multi_reduction <add>, %40, %cst_30 [0] : vector<16x32xf32> to vector<32xf32>
      %70 = vector.shape_cast %69 : vector<32xf32> to vector<1x32xf32>
      %cst_31 = arith.constant 1.600000e+01 : f32
      %71 = vector.broadcast %cst_31 : f32 to vector<1x32xf32>
      %72 = arith.divf %70, %71 : vector<1x32xf32>
      %73 = vector.broadcast %72 : vector<1x32xf32> to vector<16x32xf32>
      %74 = arith.subf %40, %73 : vector<16x32xf32>
      %75 = arith.mulf %74, %74 : vector<16x32xf32>
      %cst_32 = arith.constant dense<0.000000e+00> : vector<32xf32>
      %76 = vector.multi_reduction <add>, %75, %cst_32 [0] : vector<16x32xf32> to vector<32xf32>
      %77 = vector.shape_cast %76 : vector<32xf32> to vector<1x32xf32>
      %cst_33 = arith.constant 1.600000e+01 : f32
      %78 = vector.broadcast %cst_33 : f32 to vector<1x32xf32>
      %79 = arith.divf %77, %78 : vector<1x32xf32>
      %cst_34 = arith.constant 9.99999974E-6 : f32
      %80 = vector.broadcast %cst_34 : f32 to vector<1x32xf32>
      %81 = arith.addf %79, %80 : vector<1x32xf32>
      %82 = math.rsqrt %81 : vector<1x32xf32>
      %83 = vector.broadcast %82 : vector<1x32xf32> to vector<16x32xf32>
      %84 = arith.mulf %74, %83 : vector<16x32xf32>
      %85 = vector.extract_strided_slice %22 {offsets = [5, 0], sizes = [1, 32], strides = [1, 1]} : vector<11x32xf32> to vector<1x32xf32>
      %86 = vector.broadcast %85 : vector<1x32xf32> to vector<16x32xf32>
      %87 = arith.mulf %84, %86 : vector<16x32xf32>
      %88 = vector.extract_strided_slice %22 {offsets = [8, 0], sizes = [1, 32], strides = [1, 1]} : vector<11x32xf32> to vector<1x32xf32>
      %89 = vector.broadcast %88 : vector<1x32xf32> to vector<16x32xf32>
      %90 = arith.addf %87, %89 : vector<16x32xf32>
      %cst_35 = arith.constant 0.000000e+00 : f32
      %91 = vector.broadcast %cst_35 : f32 to vector<16x32xf32>
      %92 = arith.maximumf %90, %91 : vector<16x32xf32>
      %93 = arith.addf %68, %92 : vector<16x32xf32>
      %cst_36 = arith.constant dense<0.000000e+00> : vector<32xf32>
      %94 = vector.multi_reduction <add>, %44, %cst_36 [0] : vector<16x32xf32> to vector<32xf32>
      %95 = vector.shape_cast %94 : vector<32xf32> to vector<1x32xf32>
      %cst_37 = arith.constant 1.600000e+01 : f32
      %96 = vector.broadcast %cst_37 : f32 to vector<1x32xf32>
      %97 = arith.divf %95, %96 : vector<1x32xf32>
      %98 = vector.broadcast %97 : vector<1x32xf32> to vector<16x32xf32>
      %99 = arith.subf %44, %98 : vector<16x32xf32>
      %100 = arith.mulf %99, %99 : vector<16x32xf32>
      %cst_38 = arith.constant dense<0.000000e+00> : vector<32xf32>
      %101 = vector.multi_reduction <add>, %100, %cst_38 [0] : vector<16x32xf32> to vector<32xf32>
      %102 = vector.shape_cast %101 : vector<32xf32> to vector<1x32xf32>
      %cst_39 = arith.constant 1.600000e+01 : f32
      %103 = vector.broadcast %cst_39 : f32 to vector<1x32xf32>
      %104 = arith.divf %102, %103 : vector<1x32xf32>
      %cst_40 = arith.constant 9.99999974E-6 : f32
      %105 = vector.broadcast %cst_40 : f32 to vector<1x32xf32>
      %106 = arith.addf %104, %105 : vector<1x32xf32>
      %107 = math.rsqrt %106 : vector<1x32xf32>
      %108 = vector.broadcast %107 : vector<1x32xf32> to vector<16x32xf32>
      %109 = arith.mulf %99, %108 : vector<16x32xf32>
      %110 = vector.extract_strided_slice %22 {offsets = [6, 0], sizes = [1, 32], strides = [1, 1]} : vector<11x32xf32> to vector<1x32xf32>
      %111 = vector.broadcast %110 : vector<1x32xf32> to vector<16x32xf32>
      %112 = arith.mulf %109, %111 : vector<16x32xf32>
      %113 = vector.extract_strided_slice %22 {offsets = [9, 0], sizes = [1, 32], strides = [1, 1]} : vector<11x32xf32> to vector<1x32xf32>
      %114 = vector.broadcast %113 : vector<1x32xf32> to vector<16x32xf32>
      %115 = arith.addf %112, %114 : vector<16x32xf32>
      %cst_41 = arith.constant 0.000000e+00 : f32
      %116 = vector.broadcast %cst_41 : f32 to vector<16x32xf32>
      %117 = arith.maximumf %115, %116 : vector<16x32xf32>
      %118 = arith.addf %93, %117 : vector<16x32xf32>
      %c0_42 = arith.constant 0 : index
      %c0_43 = arith.constant 0 : index
      %119 = vector.load %arg17[%c0_42, %c0_43] : memref<16x32xf32, #tpu.memory_space<vmem>>, vector<16x32xf32>
      %c0_i32_44 = arith.constant 0 : i32
      %120 = arith.cmpi eq, %arg0, %c0_i32_44 : i32
      %121 = vector.extract_strided_slice %20 {offsets = [0, 128], sizes = [16, 32], strides = [1, 1]} : vector<16x160xf32> to vector<16x32xf32>
      %122 = arith.select %120, %121, %119 : vector<16x32xf32>
      %c0_45 = arith.constant 0 : index
      %c0_46 = arith.constant 0 : index
      %c0_47 = arith.constant 0 : index
      %123 = vector.load %arg9[%c0_45, %c0_46, %c0_47] : memref<1x64x32xf32, #tpu.memory_space<vmem>>, vector<1x64x32xf32>
      %124 = vector.shape_cast %123 : vector<1x64x32xf32> to vector<64x32xf32>
      %125 = vector.extract_strided_slice %124 {offsets = [0, 0], sizes = [32, 32], strides = [1, 1]} : vector<64x32xf32> to vector<32x32xf32>
      %cst_48 = arith.constant dense<0.000000e+00> : vector<16x32xf32>
      %126 = tpu.matmul %122, %125, %cst_48 {dimension_numbers = #tpu.dot_dimension_numbers<[1], [0], [0], [1], [0, 0, 1, 1], [], []>} : vector<16x32xf32>, vector<32x32xf32>, vector<16x32xf32> -> vector<16x32xf32>
      %127 = vector.extract_strided_slice %124 {offsets = [32, 0], sizes = [32, 32], strides = [1, 1]} : vector<64x32xf32> to vector<32x32xf32>
      %cst_49 = arith.constant dense<0.000000e+00> : vector<16x32xf32>
      %128 = tpu.matmul %118, %127, %cst_49 {dimension_numbers = #tpu.dot_dimension_numbers<[1], [0], [0], [1], [0, 0, 1, 1], [], []>} : vector<16x32xf32>, vector<32x32xf32>, vector<16x32xf32> -> vector<16x32xf32>
      %129 = arith.addf %126, %128 : vector<16x32xf32>
      %130 = vector.extract_strided_slice %22 {offsets = [10, 0], sizes = [1, 32], strides = [1, 1]} : vector<11x32xf32> to vector<1x32xf32>
      %131 = vector.broadcast %130 : vector<1x32xf32> to vector<16x32xf32>
      %132 = arith.addf %129, %131 : vector<16x32xf32>
      %133 = arith.negf %132 : vector<16x32xf32>
      %134 = math.exp %133 : vector<16x32xf32>
      %cst_50 = arith.constant 1.000000e+00 : f32
      %135 = vector.broadcast %cst_50 : f32 to vector<16x32xf32>
      %136 = arith.addf %135, %134 : vector<16x32xf32>
      %137 = arith.divf %135, %136 : vector<16x32xf32>
      %138 = arith.mulf %137, %118 : vector<16x32xf32>
      %cst_51 = arith.constant 1.000000e+00 : f32
      %139 = vector.broadcast %cst_51 : f32 to vector<16x32xf32>
      %140 = arith.subf %139, %137 : vector<16x32xf32>
      %141 = arith.mulf %140, %122 : vector<16x32xf32>
      %142 = arith.addf %138, %141 : vector<16x32xf32>
      %c0_52 = arith.constant 0 : index
      %c0_53 = arith.constant 0 : index
      %143 = vector.load %arg17[%c0_52, %c0_53] : memref<16x32xf32, #tpu.memory_space<vmem>>, vector<16x32xf32>
      tpu.vector_store %arg17[%c0_52, %c0_53], %142 {strides = array<i32>} : memref<16x32xf32, #tpu.memory_space<vmem>>, vector<16x32xf32>,
      %c2_i32 = arith.constant 2 : i32
      %144 = arith.cmpi eq, %arg0, %c2_i32 : i32
      %145 = arith.extui %144 : i1 to i32
      %c0_i32_54 = arith.constant 0 : i32
      %146 = arith.cmpi ne, %145, %c0_i32_54 : i32
      scf.if %146 {
        %c0_55 = arith.constant 0 : index
        %c0_56 = arith.constant 0 : index
        %147 = vector.load %arg5[%c0_55, %c0_56] : memref<2x16xf32, #tpu.memory_space<vmem>>, vector<2x16xf32>
        %cst_57 = arith.constant dense<0.000000e+00> : vector<2x32xf32>
        %148 = tpu.matmul %147, %142, %cst_57 {dimension_numbers = #tpu.dot_dimension_numbers<[1], [0], [0], [1], [0, 0, 1, 1], [], []>} : vector<2x16xf32>, vector<16x32xf32>, vector<2x32xf32> -> vector<2x32xf32>
        %c0_58 = arith.constant 0 : index
        %c0_59 = arith.constant 0 : index
        %149 = vector.load %arg11[%c0_58, %c0_59] : memref<32x32xf32, #tpu.memory_space<vmem>>, vector<32x32xf32>
        %cst_60 = arith.constant dense<0.000000e+00> : vector<2x32xf32>
        %150 = tpu.matmul %148, %149, %cst_60 {dimension_numbers = #tpu.dot_dimension_numbers<[1], [0], [0], [1], [0, 0, 1, 1], [], []>} : vector<2x32xf32>, vector<32x32xf32>, vector<2x32xf32> -> vector<2x32xf32>
        %c0_61 = arith.constant 0 : index
        %c0_62 = arith.constant 0 : index
        %151 = vector.load %arg6[%c0_61, %c0_62] : memref<2x20xf32, #tpu.memory_space<vmem>>, vector<2x20xf32>
        %c0_63 = arith.constant 0 : index
        %c0_64 = arith.constant 0 : index
        %152 = vector.load %arg12[%c0_63, %c0_64] : memref<20x32xf32, #tpu.memory_space<vmem>>, vector<20x32xf32>
        %cst_65 = arith.constant dense<0.000000e+00> : vector<2x32xf32>
        %153 = tpu.matmul %151, %152, %cst_65 {dimension_numbers = #tpu.dot_dimension_numbers<[1], [0], [0], [1], [0, 0, 1, 1], [], []>} : vector<2x20xf32>, vector<20x32xf32>, vector<2x32xf32> -> vector<2x32xf32>
        %154 = arith.addf %150, %153 : vector<2x32xf32>
        %c0_66 = arith.constant 0 : index
        %c0_67 = arith.constant 0 : index
        %155 = vector.load %arg13[%c0_66, %c0_67] : memref<1x32xf32, #tpu.memory_space<vmem>>, vector<1x32xf32>
        %156 = vector.broadcast %155 : vector<1x32xf32> to vector<2x32xf32>
        %157 = arith.addf %154, %156 : vector<2x32xf32>
        %cst_68 = arith.constant 0.000000e+00 : f32
        %158 = vector.broadcast %cst_68 : f32 to vector<2x32xf32>
        %159 = arith.maximumf %157, %158 : vector<2x32xf32>
        %c0_69 = arith.constant 0 : index
        %c0_70 = arith.constant 0 : index
        %160 = vector.load %arg14[%c0_69, %c0_70] : memref<32x4xf32, #tpu.memory_space<vmem>>, vector<32x4xf32>
        %cst_71 = arith.constant dense<0.000000e+00> : vector<2x4xf32>
        %161 = tpu.matmul %159, %160, %cst_71 {dimension_numbers = #tpu.dot_dimension_numbers<[1], [0], [0], [1], [0, 0, 1, 1], [], []>} : vector<2x32xf32>, vector<32x4xf32>, vector<2x4xf32> -> vector<2x4xf32>
        %c0_72 = arith.constant 0 : index
        %c0_73 = arith.constant 0 : index
        %162 = vector.load %arg15[%c0_72, %c0_73] : memref<1x4xf32, #tpu.memory_space<vmem>>, vector<1x4xf32>
        %163 = vector.broadcast %162 : vector<1x4xf32> to vector<2x4xf32>
        %164 = arith.addf %161, %163 : vector<2x4xf32>
        %c0_74 = arith.constant 0 : index
        %c0_75 = arith.constant 0 : index
        %165 = vector.load %arg16[%c0_74, %c0_75] : memref<2x4xf32, #tpu.memory_space<vmem>>, vector<2x4xf32>
        tpu.vector_store %arg16[%c0_74, %c0_75], %164 {strides = array<i32>} : memref<2x4xf32, #tpu.memory_space<vmem>>, vector<2x4xf32>,
      } else {
      }
    } else {
    }
    return
  }
  func.func @transform_0(%arg0: i32, %arg1: i32) -> (i32, i32) {
    %c0_i32 = arith.constant 0 : i32
    %c0_i32_0 = arith.constant 0 : i32
    %c0_i32_1 = arith.constant 0 : i32
    return %c0_i32, %c0_i32_0 : i32, i32
  }
  func.func @transform_1(%arg0: i32, %arg1: i32) -> (i32, i32) {
    %c0_i32 = arith.constant 0 : i32
    %c0_i32_0 = arith.constant 0 : i32
    return %arg1, %c0_i32 : i32, i32
  }
  func.func @transform_2(%arg0: i32, %arg1: i32) -> (i32, i32) {
    %c0_i32 = arith.constant 0 : i32
    %c0_i32_0 = arith.constant 0 : i32
    %c0_i32_1 = arith.constant 0 : i32
    return %c0_i32, %c0_i32_0 : i32, i32
  }
  func.func @transform_3(%arg0: i32, %arg1: i32) -> (i32, i32) {
    %c0_i32 = arith.constant 0 : i32
    %c0_i32_0 = arith.constant 0 : i32
    %c0_i32_1 = arith.constant 0 : i32
    return %c0_i32, %c0_i32_0 : i32, i32
  }
  func.func @transform_4(%arg0: i32, %arg1: i32) -> (i32, i32) {
    %c0_i32 = arith.constant 0 : i32
    %c0_i32_0 = arith.constant 0 : i32
    %c0_i32_1 = arith.constant 0 : i32
    return %c0_i32, %c0_i32_0 : i32, i32
  }
  func.func @transform_5(%arg0: i32, %arg1: i32) -> (i32, i32, i32) {
    %c0_i32 = arith.constant 0 : i32
    %c0_i32_0 = arith.constant 0 : i32
    %c0_i32_1 = arith.constant 0 : i32
    return %arg0, %c0_i32, %c0_i32_0 : i32, i32, i32
  }
  func.func @transform_6(%arg0: i32, %arg1: i32) -> (i32, i32, i32, i32) {
    %c0_i32 = arith.constant 0 : i32
    %c0_i32_0 = arith.constant 0 : i32
    %c0_i32_1 = arith.constant 0 : i32
    return %arg0, %arg1, %c0_i32, %c0_i32_0 : i32, i32, i32, i32
  }
  func.func @transform_7(%arg0: i32, %arg1: i32) -> (i32, i32, i32) {
    %c0_i32 = arith.constant 0 : i32
    %c0_i32_0 = arith.constant 0 : i32
    %c0_i32_1 = arith.constant 0 : i32
    return %arg0, %c0_i32, %c0_i32_0 : i32, i32, i32
  }
  func.func @transform_8(%arg0: i32, %arg1: i32) -> (i32, i32, i32) {
    %c0_i32 = arith.constant 0 : i32
    %c0_i32_0 = arith.constant 0 : i32
    %c0_i32_1 = arith.constant 0 : i32
    return %arg0, %c0_i32, %c0_i32_0 : i32, i32, i32
  }
  func.func @transform_9(%arg0: i32, %arg1: i32) -> (i32, i32) {
    %c0_i32 = arith.constant 0 : i32
    %c0_i32_0 = arith.constant 0 : i32
    %c0_i32_1 = arith.constant 0 : i32
    return %c0_i32, %c0_i32_0 : i32, i32
  }
  func.func @transform_10(%arg0: i32, %arg1: i32) -> (i32, i32) {
    %c0_i32 = arith.constant 0 : i32
    %c0_i32_0 = arith.constant 0 : i32
    %c0_i32_1 = arith.constant 0 : i32
    return %c0_i32, %c0_i32_0 : i32, i32
  }
  func.func @transform_11(%arg0: i32, %arg1: i32) -> (i32, i32) {
    %c0_i32 = arith.constant 0 : i32
    %c0_i32_0 = arith.constant 0 : i32
    %c0_i32_1 = arith.constant 0 : i32
    return %c0_i32, %c0_i32_0 : i32, i32
  }
  func.func @transform_12(%arg0: i32, %arg1: i32) -> (i32, i32) {
    %c0_i32 = arith.constant 0 : i32
    %c0_i32_0 = arith.constant 0 : i32
    %c0_i32_1 = arith.constant 0 : i32
    return %c0_i32, %c0_i32_0 : i32, i32
  }
  func.func @transform_13(%arg0: i32, %arg1: i32) -> (i32, i32) {
    %c0_i32 = arith.constant 0 : i32
    %c0_i32_0 = arith.constant 0 : i32
    %c0_i32_1 = arith.constant 0 : i32
    return %c0_i32, %c0_i32_0 : i32, i32
  }
  func.func @transform_14(%arg0: i32, %arg1: i32) -> (i32, i32) {
    %c0_i32 = arith.constant 0 : i32
    %c0_i32_0 = arith.constant 0 : i32
    %c0_i32_1 = arith.constant 0 : i32
    return %c0_i32, %c0_i32_0 : i32, i32
  }
}

</mosaic_0001>

<bundles_post_ra>
// kernel: tpu_custom_call.1
= control target key start
LH: loop header
LB: loop body
LE: loop exit
PB: predicated region body
PF: predicated region fallthrough
CT: control target
= control target key end

     0   :  { %s2604_s0 = inlined_call_operand.vmem [shape: f32[16,32], index: 0, kind: input, shape index: {}]   ;;  %s2605_s1 = inlined_call_operand.vmem [shape: f32[80,16], index: 1, kind: input, shape index: {}]   ;;  %s2606_s2 = inlined_call_operand.vmem [shape: f32[16,1], index: 2, kind: input, shape index: {}]   ;;  %s2607_s3 = inlined_call_operand.vmem [shape: f32[2,16], index: 3, kind: input, shape index: {}]   ;;  %s2608_s4 = inlined_call_operand.vmem [shape: f32[2,20], index: 4, kind: input, shape index: {}]   ;;  %s2609_s5 = inlined_call_operand.vmem [shape: f32[3,32,160], index: 5, kind: input, shape index: {}]   ;;  %s2610_s6 = inlined_call_operand.hbm [shape: f32[3,5,32,160], index: 6, kind: input, shape index: {}]   ;;  %s2611_s7 = inlined_call_operand.vmem [shape: f32[3,64,32], index: 7, kind: input, shape index: {}]   ;;  %s2612_s8 = inlined_call_operand.vmem [shape: f32[3,11,32], index: 8, kind: input, shape index: {}]   ;;  %s2613_s9 = inlined_call_operand.vmem [shape: f32[32,32], index: 9, kind: input, shape index: {}]   ;;  %s2614_s10 = inlined_call_operand.vmem [shape: f32[20,32], index: 10, kind: input, shape index: {}]   ;;  %s2615_s11 = inlined_call_operand.vmem [shape: f32[1,32], index: 11, kind: input, shape index: {}]   ;;  %s2616_s12 = inlined_call_operand.vmem [shape: f32[32,4], index: 12, kind: input, shape index: {}]   ;;  %s2617_s13 = inlined_call_operand.vmem [shape: f32[1,4], index: 13, kind: input, shape index: {}]   ;;  %s2618_s14 = inlined_call_operand.hbm [shape: f32[2,4], index: 14, kind: output, shape index: {}]  }
   0x1   :  { %2625 = sst [smem:[#allocation12_spill]] %s2607_s3 }
   0x2   :  { %2626 = sst [smem:[#allocation13_spill]] %s2608_s4 }
   0x3   :  { %2627 = sst [smem:[#allocation14_spill]] %s2610_s6 }
   0x4   :  { %2628 = sst [smem:[#allocation15_spill]] %s2613_s9 }
   0x5   :  { %2629 = sst [smem:[#allocation16_spill]] %s2614_s10 }
   0x6   :  { %2630 = sst [smem:[#allocation17_spill]] %s2615_s11 }
   0x7   :  { %2631 = sst [smem:[#allocation18_spill]] %s2616_s12 }
   0x8   :  { %2632 = sst [smem:[#allocation19_spill]] %s2617_s13 }
   0x9   :  { %2633 = sst [smem:[#allocation20_spill]] %s2618_s14 }
   0xa   :  { %19 = vsyncpa [#allocation5], 0 }
   0xb   :  { %21 = vsyncpa [#allocation5 + $0x1], 0 }
   0xc   :  { %22 = vsyncpa [#allocation6], 0  ;;  %s2238_s29 = smov 0   ;;  %s2240_s30 = smov 0  }
   0xd   :  { %s2242_s15 = smov 0   ;;  %s2244_s16 = smov 0  }
   0xe   :  { %s2246_s17 = smov 0   ;;  %s2248_s18 = smov 0  }
   0xf   :  { %s2250_s19 = smov 0   ;;  %s2252_s20 = smov 0  }
  0x10 LB: > { %s2621_s21 = sadd.s32 4294967295, %s2150_s20   ;;  %s37_s22 = sadd.s32 1, %s2142_s18  ;;  %s2150_s20 = sphi %s2252_s20, %s28_s20   ;;  %s2146_s19 = sphi %s2250_s19, %s2659_s19   ;;  %s2142_s18 = sphi %s2248_s18, %s2658_s18   ;;  %s2138_s17 = sphi %s2246_s17, %s2657_s17   ;;  %s2134_s16 = sphi %s2244_s16, %s2656_s16   ;;  %s2130_s15 = sphi %s2242_s15, %s2655_s15   ;;  %s2126_s30 = sphi %s2240_s30, %s2654_s30   ;;  %s2122_s29 = sphi %s2238_s29, %s2653_s29  }
  0x11   : > { %p38_p0 = scmp.ge.s32.totalorder %s37_s22, 5  ;;  %s40_s23 = sadd.s32 1, %s2146_s19 }
  0x12   : > { %s185_s24 = sadd.s32 1, %s2130_s15  ;;  %p192_p1 = scmp.ne.s32.totalorder %s2130_s15, %s2126_s30 }
  0x13   : > { %s2661_s22 = smov (%p38_p0, %s37_s22), 0  ;;  %s2663_s23 = smov (!%p38_p0, %s40_s23), %s2146_s19 }
  0x14   : > { %2634 = sst [smem:[#allocation10_spill]] %s2661_s22  ;;  %s181_s25 = ssub.s32 %s2142_s18, %s2661_s22 }
  0x15   : > { %p193_p2 = scmp.eq.s32.totalorder %s2150_s20, 0  ;;  %p42_p3 = scmp.ge.s32.totalorder %s2663_s23, 3 }
  0x16   : > { %p198_p4 = scmp.ne.s32.totalorder %s2126_s30, %s2122_s29  ;;  %p199_p6 = scmp.eq.s32.totalorder %s2621_s21, 0 }
  0x17   : > { %p2289_p5 = por %p193_p2, %p192_p1  ;;  %s2665_s23 = smov (%p42_p3, %s2663_s23), 0 }
  0x18   : > { %2636 = sst [smem:[#allocation11_spill]] %s2665_s23  ;;  %p2297_p7 = por %p199_p6, %p198_p4 }
  0x19   : > { %s180_s28 = ssub.s32 %s2146_s19, %s2665_s23  ;;  %p1936_p8 = scmp.lt.s32.totalorder %s2150_s20, 15 }
  0x1a   : > { %s182_s22 = sor.u32 %s181_s25, %s180_s28  ;;  %s444_s14 = sand.u32 1, %s2130_s15  }
  0x1b   : > { %p183_p9 = scmp.eq.s32.totalorder %s182_s22, 0  ;;  %s1775_s29 = sshll.u32 %s444_s14, 6 }
  0x1c   : > { %s1776_s13 = sshll.u32 %s2142_s18, 3  ;;  %s1925_s12 = smul.u32 40, %s2146_s19 }
  0x1d   : > { %s2307_s11 = scalar_select %p183_p9, %s2130_s15, %s185_s24  }
  0x1e   : > { %s448_s4 = scalar_lea.vmem [#allocation4], %s1775_s29  ;;  %p2312_p10 = pnand %p1936_p8, %p2289_p5 }
  0x1f   : > { %s457_s21 = sshll.u32 %s448_s4, 4  ;;  %s454_s3 = sadd.s32 %s1925_s12, %s1776_s13  ;;  %s458_s21 = int_to_ptr.vmem [resolvable:$true] %s457_s21 }
  0x20   : > { %s1777_s23 = sshll.u32 %s454_s3, 7  ;;  %s2639_s6 = sld [smem:[#allocation14_spill]] }
  0x21   : > { %p1778_p11 = scmp.ge.s32.totalorder %s2150_s20, 1  ;;  %s445_s28 = scalar_lea.sflag [#allocation5], %s444_s14 }
  0x22   : > { %p2030_p12 = pneg %p2312_p10  ;;  %s2041_s24 = scalar_lea.vmem %s458_s21, 1024 }
  0x23   : > { %p2042_p13 = scmp.ne.s32.totalorder %s458_s21, %s2041_s24  ;;  %s2152_s4 = smov [#allocation4]  }
  0x24   : > { %s2046_s26 = sshll.u32 %s2152_s4, 4  ;;  %s2047_s26 = int_to_ptr.vmem [resolvable:$false] %s2046_s26 }
  0x25   : > { %p2044_p0 = pnand %p2042_p13, %p2030_p12  ;;  %s2048_s29 = scalar_lea.vmem %s2047_s26, 2048 }
  0x26   : > { %s456_s22 = scalar_lea.hbm %s2639_s6, %s1777_s23  ;;  %p2049_p2 = scmp.lt.s32.totalorder %s458_s21, %s2047_s26 }
  0x27   : > { %p2045_p1 = pneg %p2044_p0  ;;  %p2050_p3 = scmp.lt.s32.totalorder %s2048_s29, %s2041_s24 }
  0x29   : > { %p2051_p4 = por %p2050_p3, %p2049_p2 }
  0x2b   : > { %p2052_p5 = pnand %p2051_p4, %p2045_p1 }
  0x2d   : > { %2055 = shalt.err (!%p2052_p5)
}
  0x2e   : > { %s2153_s3 = smov 256   ;;  %s2154_s10 = smov 16  }
  0x2f   : > { %1935 = dma.hbm_to_vmem [thread:$0]  (!%p2312_p10), %s456_s22, 1024, %s458_s21, %s445_s28, %s2153_s3, %s2153_s3, %s2154_s10  }
  0x30   : > { %p481_p6 = scmp.lt.s32.totalorder %s2150_s20, 16 }
  0x32   : > { %p482_p8 = pnand %p1778_p11, %p481_p6 }
  0x33   : > { %s487_s12 = sand.u32 (!%p482_p8), 1, %s2126_s30  }
  0x34   : > { %485 = sbr.rel (%p482_p8) target bundleno = 1980 (0x7bc), region = 76  ;;  %s1779_s13 = sshll.u32 (!%p482_p8), %s487_s12, 6 }
  0x35   : > { %s488_s14 = scalar_lea.sflag (!%p482_p8), [#allocation5], %s487_s12  ;;  %s2328_s23 = scalar_lea.vmem (!%p482_p8), [#allocation4], %s1779_s13 }
  0x39   : > { %2113 = dma.done.wait (%p2297_p7), %s488_s14, 1024  }
  0x3a   : > { %2115 = vsyncadd (%p2297_p7), %s488_s14, 4294966272  ;;  %s1780_s9 = sshll.u32 %s2134_s16, 1  ;;  %p557_p9 = scmp.lt.s32.totalorder %s2138_s17, 2 }
  0x3b   : > { %p552_p10 = scmp.lt.s32.totalorder %s1780_s9, 9  ;;  %p572_p11 = scmp.eq.s32.totalorder %s2138_s17, 0 }
  0x3c   : > { %s558_s21 = scalar_select %p557_p9, %s2138_s17, 2 }
  0x3d   : > { %s2667_s9 = smov (!%p552_p10, %s1780_s9), 9  ;;  %p573_p7 = scmp.eq.s32.totalorder %s2134_s16, 0 }
  0x3e   : > { %s1814_s25 = sshll.u32 %s558_s21, 6  ;;  %s1816_s22 = sshll.u32 %s558_s21, 4 }
  0x3f   : > { %s1781_s28 = sshll.u32 %s2667_s9, 3  ;;  %s2341_s27 = scalar_lea.vmem %s2609_s5, %s1814_s25 }
  0x40   : > { %s2346_s3 = scalar_lea.vmem %s2605_s1, %s1781_s28  ;;  %s2351_s13 = scalar_lea.vmem %s2611_s7, %s1814_s25 }
  0x41   : > { %s2356_s21 = scalar_lea.vmem %s2612_s8, %s1816_s22  ;;  %p574_p12 = pnand %p573_p7, %p572_p11 }
  0x43   : > { %577 = sbr.rel (%p574_p12) target bundleno = 74 (0x4a), region = 84 }
  0x48   : > { %v578_v0 = vld [vmem:[%s2604_s0] sm:$0xff]  ;;  %vm580_vm0 = vcmask 261120   ;;  %v579_v1 = vld [vmem:[%s2604_s0 + $0x8] sm:$0xff] }
  0x49   : > { %581 = vst.msk [vmem:[#allocation2] sm:$0xff] %vm580_vm0, %v578_v0  ;;  %582 = vst.msk [vmem:[#allocation2 + $0x8] sm:$0xff] %vm580_vm0, %v579_v1 }
  0x4a PF: > { %p1788_p13 = scmp.ne.s32.totalorder %s2134_s16, 0 }
  0x4c   : > { %585 = sbr.rel (%p1788_p13) target bundleno = 287 (0x11f), region = 88 }
  0x51   : > { %v595_v2 = vld [vmem:[%s2341_s27 + $0x38] sm:$0xff]  ;;  %v594_v3 = vld [vmem:[%s2341_s27 + $0x30] sm:$0xff]  ;;  %v593_v4 = vld [vmem:[%s2341_s27 + $0x28] sm:$0xff]  ;;  %vm596_vm1 = vcmask 261120   ;;  %v2155_v12 = vmov 0.0  }
  0x52   : > { %627 = vmatprep.subr.mxu0 %v595_v2  ;;  %1917 = vmatprep.subr.mxu1 %v595_v2  ;;  %v592_v5 = vld [vmem:[%s2341_s27 + $0x20] sm:$0xff]  ;;  %v591_v6 = vld [vmem:[%s2341_s27 + $0x18] sm:$0xff]  ;;  %v590_v7 = vld [vmem:[%s2341_s27 + $0x10] sm:$0xff] }
  0x53   : > { %628 = vmatpush1.msra.mxu0 %v594_v3  ;;  %1921 = vmatpush1.msra.mxu1 %v594_v3  ;;  %v589_v8 = vld [vmem:[%s2341_s27 + $0x8] sm:$0xff]  ;;  %v588_v9 = vld [vmem:[%s2341_s27] sm:$0xff] }
  0x54   : > { %629 = vmatprep.subr.mxu0 %v593_v4  ;;  %1918 = vmatprep.subr.mxu1 %v593_v4  ;;  %v586_v10 = vld [vmem:[#allocation2] sm:$0xff]  ;;  %v587_v11 = vld [vmem:[#allocation2 + $0x8] sm:$0xff] }
  0x55   : > { %630 = vmatpush1.msra.mxu0 %v592_v5  ;;  %1922 = vmatpush1.msra.mxu1 %v592_v5 }
  0x56   : > { %631 = vmatprep.subr.mxu0 %v591_v6  ;;  %1919 = vmatprep.subr.mxu1 %v591_v6 }
  0x57   : > { %632 = vmatpush1.msra.mxu0 %v590_v7  ;;  %1923 = vmatpush1.msra.mxu1 %v590_v7 }
  0x58   : > { %633 = vmatprep.subr.mxu0 %v589_v8  ;;  %1920 = vmatprep.subr.mxu1 %v589_v8 }
  0x59   : > { %634 = vmatpush1.msra.mxu0 %v588_v9  ;;  %1924 = vmatpush1.msra.mxu1 %v588_v9 }
  0x5a   : > { %667 = vmatprep.mubr.f32.mxu0 %v2155_v12  ;;  %673 = vmatprep.mubr.f32.mxu1 %v2155_v12 }
  0x5b   : > { %1789 = vmatmul.mubr.msk.f32.vlgmr.msra.gmra.mxu0 %vm596_vm1, %v586_v10  ;;  %1790 = vmatmul.mubr.msk.f32.vlgmr.msra.gmra.mxu1 %vm596_vm1, %v587_v11 }
 0x11b   : > { %v669_v13 = vpop.f32.mrf.mxu0  ;;  %v675_v14 = vpop.f32.mrf.mxu1 }
 0x11c   : > { %680 = vst [vmem:[#allocation3] sm:$0xff] %v669_v13  ;;  %682 = vst [vmem:[#allocation3 + $0x10] sm:$0xff] %v675_v14 }
 0x11d   : > { %v671_v15 = vpop.f32.mrf.mxu0  ;;  %v677_v16 = vpop.f32.mrf.mxu1 }
 0x11e   : > { %681 = vst.msk [vmem:[#allocation3 + $0x8] sm:$0xff] %vm596_vm1, %v671_v15  ;;  %683 = vst.msk [vmem:[#allocation3 + $0x18] sm:$0xff] %vm596_vm1, %v677_v16 }
 0x11f PF: > { %v687_v17 = vld [vmem:[#allocation2 + $0x8] sm:$0xff]  ;;  %v686_v18 = vld [vmem:[#allocation2] sm:$0xff]  ;;  %vm688_vm2 = vcmask 130048   ;;  %v779_v23 = vld [vmem:[%s2328_s23 + $0x28] sm:$0xff]  ;;  %v2156_v29 = vmov 0.0   ;;  %vm782_vm3 = vcmask 261120  }
 0x120   : > { %v684_v19 = vld [vmem:[%s2346_s3] sm:$0xff]  ;;  %1850 = vmatprep.subr.mxu0 %v687_v17  ;;  %v781_v20 = vld [vmem:[%s2328_s23 + $0x38] sm:$0xff]  ;;  %v778_v24 = vld [vmem:[%s2328_s23 + $0x20] sm:$0xff]  ;;  %853 = vmatprep.mubr.f32.mxu1 %v2156_v29  ;;  %p1795_p0 = scmp.ne.s32.totalorder %s2134_s16, 4 }
 0x121   : > { %1854 = vmatprep.mubr.msk.f32.mxu0 %vm688_vm2, %v684_v19  ;;  %v780_v21 = vld [vmem:[%s2328_s23 + $0x30] sm:$0xff]  ;;  %1851 = vmatpush3.msra.mxu0 %v687_v17  ;;  %v685_v22 = vld [vmem:[%s2346_s3 + $0x8] sm:$0xff]  ;;  %v775_v27 = vld [vmem:[%s2328_s23 + $0x8] sm:$0xff]  ;;  %s2158_s16 = smov (!%p1795_p0), 32   ;;  %s2159_s27 = smov (!%p1795_p0), 96  }
 0x122   : > { %813 = vmatprep.subr.mxu1 %v781_v20  ;;  %1852 = vmatprep.subr.mxu0 %v686_v18  ;;  %v777_v25 = vld [vmem:[%s2328_s23 + $0x18] sm:$0xff]  ;;  %v776_v26 = vld [vmem:[%s2328_s23 + $0x10] sm:$0xff]  ;;  %v774_v28 = vld [vmem:[%s2328_s23] sm:$0xff]  ;;  %p1802_p1 = scmp.ne.s32.totalorder (!%p1795_p0), %s2138_s17, 2 }
 0x123   : > { %814 = vmatpush1.msra.mxu1 %v780_v21  ;;  %1853 = vmatpush3.msra.mxu0 %v686_v18  ;;  %v770_v32 = vld [vmem:[#allocation3] sm:$0xff]  ;;  %v772_v37 = vld [vmem:[#allocation3 + $0x10] sm:$0xff] }
 0x124   : > { %815 = vmatprep.subr.mxu1 %v779_v23  ;;  %1855 = vmatmul.mubr.msk.f32.vlgmr.msra.gmra.mxu0 %vm688_vm2, %v685_v22 }
 0x125   : > { %816 = vmatpush1.msra.mxu1 %v778_v24  ;;  %v771_v34 = vld [vmem:[#allocation3 + $0x8] sm:$0xff]  ;;  %v773_v40 = vld [vmem:[#allocation3 + $0x18] sm:$0xff] }
 0x126   : > { %817 = vmatprep.subr.mxu1 %v777_v25 }
 0x127   : > { %818 = vmatpush1.msra.mxu1 %v776_v26 }
 0x128   : > { %819 = vmatprep.subr.mxu1 %v775_v27 }
 0x129   : > { %820 = vmatpush1.msra.mxu1 %v774_v28 }
 0x1e4   : > { %v1856_v30 = vpop.f32.mrf.mxu0 }
 0x1e6   : > { %v761_v31 = vpop.f32.mrf.mxu0 }
 0x1e7   : > { %1793 = vmatmul.mubr.msk.f32.vlgmr.msra.gmra.mxu1 %vm782_vm3, %v761_v31 }
 0x1e8   : > { %859 = vmatprep.mubr.f32.mxu1 %v2156_v29 }
 0x1eb   : > { %1794 = vmatmul.mubr.msk.f32.gmra.mxu1 %vm782_vm3, %v1856_v30 }
 0x2a7   : > { %v855_v33 = vpop.f32.mrf.mxu1 }
 0x2a8   : > { %v866_v35 = vadd.f32 %v855_v33, %v770_v32 }
 0x2a9   : > { %v857_v36 = vpop.f32.mrf.mxu1 }
 0x2aa   : > { %870 = vst [vmem:[#allocation3] sm:$0xff] %v866_v35  ;;  %v867_v38 = vadd.f32 %v857_v36, %v771_v34 }
 0x2ab   : > { %v861_v39 = vpop.f32.mrf.mxu1 }
 0x2ac   : > { %871 = vst.msk [vmem:[#allocation3 + $0x8] sm:$0xff] %vm782_vm3, %v867_v38  ;;  %v868_v41 = vadd.f32 %v861_v39, %v772_v37  ;;  %877 = sbr.rel (%p1795_p0) target bundleno = 1959 (0x7a7), region = 92 }
 0x2ad   : > { %v863_v42 = vpop.f32.mrf.mxu1 }
 0x2ae   : > { %872 = vst [vmem:[#allocation3 + $0x10] sm:$0xff] %v868_v41  ;;  %v869_v43 = vadd.f32 %v863_v42, %v773_v40 }
 0x2b0   : > { %873 = vst.msk [vmem:[#allocation3 + $0x18] sm:$0xff] %vm782_vm3, %v869_v43 }
 0x2b1   : > { %v884_v44 = vld [vmem:[%s2606_s2] sm:$0xff]  ;;  %v2157_v45 = vmov 0   ;;  %v885_v46 = vld [vmem:[%s2606_s2 + $0x8] sm:$0xff]  ;;  %v886_v47 = vlaneseq  ;;  %v2410_v52 = vld [vmem:[#allocation3] sm:$0xff]  ;;  %vm993_vm4 = vcmask 523520   ;;  %vm1054_vm5 = vcmask 1048320  }
 0x2b2   : > { %2013 = vset.pattern.permute.xlu0 %v2157_v45  ;;  %v2407_v50 = vld [vmem:[%s2356_s21] sm:$0xff]  ;;  %v2433_v4 = vld [vmem:[%s2356_s21 + $0x8] sm:$0x7]  ;;  %v1125_v8 = vld [vmem:[%s2351_s13 + $0x18] sm:$0xff]  ;;  %s1117_s26 = scalar_select %p572_p11, 1, 0 }
 0x2b3   : > { %894 = vperm.xlu0 %2013, %v884_v44   ;;  %v2403_v48 = vshrl.u32 %v886_v47, 7  ;;  %v1129_v9 = vld [vmem:[%s2351_s13 + $0x38] sm:$0xff]  ;;  %v1124_v10 = vld [vmem:[%s2351_s13 + $0x10] sm:$0xff]  ;;  %1868 = vmatprep.subr.mxu1 %v1125_v8  ;;  %s2640_s10 = sld [smem:[#allocation16_spill]] (!%p1802_p1) }
 0x2b4   : > { %1857 = vmatprep.subr.mxu0 %v1129_v9  ;;  %1869 = vmatpush3.msra.mxu1 %v1125_v8  ;;  %s2641_s14 = sld [smem:[#allocation12_spill]] (!%p1802_p1) }
 0x2b5   : > { %v916_v49 = vsub.s32 0, %v2403_v48  ;;  %v932_v53 = vsub.s32 2, %v2403_v48  ;;  %v2414_v57 = vld [vmem:[#allocation3 + $0x10] sm:$0xff]  ;;  %v1024_v59 = vsub.s32 5, %v2403_v48  ;;  %v942_v62 = vsub.s32 3, %v2403_v48  ;;  %1858 = vmatpush3.msra.mxu0 %v1129_v9  ;;  %1870 = vmatprep.subr.mxu1 %v1124_v10  ;;  %s2642_s9 = sld [smem:[#allocation15_spill]] (!%p1802_p1) }
 0x2b6   : > { %v1085_v0 = vsub.s32 6, %v2403_v48  ;;  %v888_v6 = vsub.s32 1, %v2403_v48  ;;  %1871 = vmatpush3.msra.mxu1 %v1124_v10  ;;  %s2643_s29 = sld [smem:[#allocation13_spill]] (!%p1802_p1) }
 0x2b7   : > { %899 = vperm.xlu0 %2013, %v885_v46   ;;  %v917_v51 = vrot.slane %v2407_v50, %v916_v49  ;;  %v933_v58 = vrot.slane %v2407_v50, %v932_v53  ;;  %v1025_v63 = vrot.slane %v2407_v50, %v1024_v59  ;;  %v943_v2 = vrot.slane %v2407_v50, %v942_v62  ;;  %s2644_s17 = sld [smem:[#allocation18_spill]] (!%p1802_p1) }
 0x2b8   : > { %v1086_v3 = vrot.slane %v2407_v50, %v1085_v0  ;;  %v1035_v5 = vrot.slane %v2433_v4, %v916_v49  ;;  %v1096_v7 = vrot.slane %v2433_v4, %v888_v6  ;;  %s2647_s3 = sld [smem:[#allocation19_spill]] (!%p1802_p1) }
 0x2bd   : > { %s2645_s21 = smov (!%p1802_p1), %s2644_s17 }
 0x32e   : > { %v895_v54 = vpop.permute.xlu0 %894 }
 0x32f   : > { %v918_v55 = vmul.f32 %v917_v51, %v895_v54  ;;  %v902_v56 = vmul.f32 %v895_v54, %v2410_v52 }
 0x331   : > { %922 = vrot.lane.b32.xlu0 %v918_v55, %s2158_s16  ;;  %906 = vrot.lane.b32.xlu1 %v902_v56, %s2159_s27 }
 0x332   : > { %v900_v60 = vpop.permute.xlu0 %899 }
 0x333   : > { %v903_v61 = vmul.f32 %v900_v60, %v2414_v57  ;;  %v919_v1 = vmul.f32 %v917_v51, %v900_v60 }
 0x335   : > { %935 = vrot.lane.b32.xlu0 %v933_v58, %s2158_s16  ;;  %908 = vrot.lane.b32.xlu1 %v903_v61, %s2159_s27 }
 0x339   : > { %924 = vrot.lane.b32.xlu1 %v919_v1, %s2158_s16  ;;  %1027 = vrot.lane.b32.xlu0 %v1025_v63, %s2158_s16 }
 0x33d   : > { %945 = vrot.lane.b32.xlu1 %v943_v2, %s2159_s27  ;;  %1088 = vrot.lane.b32.xlu0 %v1086_v3, %s2159_s27 }
 0x341   : > { %1037 = vrot.lane.b32.xlu1 %v1035_v5, %s2158_s16 }
 0x345   : > { %1098 = vrot.lane.b32.xlu1 %v1096_v7, %s2159_s27 }
 0x3a3   : > { %v923_v11 = vpop.permute.xlu0 %922  ;;  %v907_v12 = vpop.permute.xlu1 %906 }
 0x3a4   : > { %v912_v13 = vsub.f32 %v2410_v52, %v907_v12 }
 0x3a6   : > { %v928_v15 = vadd.f32 %v923_v11, %v912_v13 }
 0x3a7   : > { %v909_v14 = vpop.permute.xlu1 %908  ;;  %v936_v16 = vpop.permute.xlu0 %935 }
 0x3a8   : > { %v913_v17 = vsub.f32 %v2414_v57, %v909_v14  ;;  %v938_v19 = vadd.f32 %v936_v16, %v928_v15 }
 0x3aa   : > { %v994_v23 = vsel %vm993_vm4, %v938_v19, 0.0 }
 0x3ab   : > { %v925_v18 = vpop.permute.xlu1 %924 }
 0x3ac   : > { %v929_v20 = vadd.f32 %v925_v18, %v913_v17  ;;  %v1028_v18 = vpop.permute.xlu0 %1027 }
 0x3ae   : > { %v939_v21 = vadd.f32 %v936_v16, %v929_v20  ;;  %v1123_v20 = vld [vmem:[%s2351_s13 + $0x8] sm:$0xff] }
 0x3af   : > { %v946_v22 = vpop.permute.xlu1 %945  ;;  %1872 = vmatprep.subr.mxu1 %v1123_v20 }
 0x3b0   : > { %v995_v24 = vsel %vm993_vm4, %v939_v21, 0.0  ;;  %v948_v25 = vadd.f32 %v946_v22, %v2410_v52  ;;  %v949_v26 = vadd.f32 %v946_v22, %v2414_v57  ;;  %v1122_v22 = vld [vmem:[%s2351_s13] sm:$0xff]  ;;  %1873 = vmatpush3.msra.mxu1 %v1123_v20  ;;  %v981_v20 = vsub.s32 4, %v2403_v48 }
 0x3b1   : > { %v996_v27 = vadd.f32 %v995_v24, %v994_v23  ;;  %v1118_v23 = vstv %s1117_s26  ;;  %1874 = vmatprep.subr.mxu1 %v1122_v22 }
 0x3b2   : > { %v1055_v28 = vsel %vm1054_vm5, %v948_v25, 0.0  ;;  %v1056_v29 = vsel %vm1054_vm5, %v949_v26, 0.0  ;;  %vm1119_vm6 = vcmp.eq.s32.totalorder %v1118_v23, 1  ;;  %1875 = vmatpush3.msra.mxu1 %v1122_v22  ;;  %v982_v22 = vrot.slane %v2407_v50, %v981_v20 }
 0x3b3   : > { %v997_v30 = vrot.slane %v996_v27, 4  ;;  %v1057_v31 = vadd.f32 %v1056_v29, %v1055_v28  ;;  %v1038_v24 = vpop.permute.xlu1 %1037  ;;  %v881_v28 = vld [vmem:[#allocation3 + $0x18] sm:$0xff]  ;;  %v987_v23 = vsub.s32 7, %v2403_v48 }
 0x3b4   : > { %v1116_v29 = vld [vmem:[#allocation2 + $0x8] sm:$0xff] }
 0x3b5   : > { %v998_v32 = vadd.f32 %v997_v30, %v996_v27  ;;  %v1058_v33 = vrot.slane %v1057_v31, 4 }
 0x3b7   : > { %v999_v34 = vrot.slane %v998_v32, 2  ;;  %v1059_v35 = vadd.f32 %v1058_v33, %v1057_v31  ;;  %v1126_v31 = vld [vmem:[%s2351_s13 + $0x20] sm:$0xff] }
 0x3b9   : > { %v1000_v36 = vadd.f32 %v999_v34, %v998_v32  ;;  %v1060_v37 = vrot.slane %v1059_v35, 2  ;;  %v2476_v32 = vsel %vm1119_vm6, %v881_v28, %v1116_v29 }
 0x3bb   : > { %v1001_v38 = vrot.slane %v1000_v36, 1  ;;  %v1061_v39 = vadd.f32 %v1060_v37, %v1059_v35 }
 0x3bd   : > { %v1002_v40 = vadd.f32 %v1001_v38, %v1000_v36  ;;  %v1062_v41 = vrot.slane %v1061_v39, 1  ;;  %v1089_v36 = vpop.permute.xlu0 %1088 }
 0x3bf   : > { %v1003_v42 = vmul.f32 0.0625, %v1002_v40  ;;  %v1063_v43 = vadd.f32 %v1062_v41, %v1061_v39  ;;  %v889_v41 = vrot.slane %v2407_v50, %v888_v6 }
 0x3c1   : > { %v1005_v44 = vsub.f32 %v939_v21, %v1003_v42  ;;  %v1064_v45 = vmul.f32 0.0625, %v1063_v43  ;;  %v1004_v46 = vsub.f32 %v938_v19, %v1003_v42  ;;  %v1128_v19 = vld [vmem:[%s2351_s13 + $0x30] sm:$0xff]  ;;  %v1127_v21 = vld [vmem:[%s2351_s13 + $0x28] sm:$0xff]  ;;  %v1099_v42 = vpop.permute.xlu1 %1098 }
 0x3c2   : > { %1859 = vmatprep.subr.mxu0 %v1128_v19 }
 0x3c3   : > { %v1007_v47 = vmul.f32 %v1005_v44, %v1005_v44  ;;  %v2455_v49 = vsub.f32 %v948_v25, %v1064_v45  ;;  %v2457_v51 = vsub.f32 %v949_v26, %v1064_v45  ;;  %v1006_v54 = vmul.f32 %v1004_v46, %v1004_v46  ;;  %1860 = vmatpush3.msra.mxu0 %v1128_v19  ;;  %v879_v25 = vld [vmem:[#allocation3 + $0x8] sm:$0xff]  ;;  %v1115_v26 = vld [vmem:[#allocation2] sm:$0xff] }
 0x3c4   : > { %1861 = vmatprep.subr.mxu0 %v1127_v21  ;;  %v2473_v27 = vsel %vm1119_vm6, %v879_v25, %v1115_v26  ;;  %v988_v26 = vrot.slane %v2407_v50, %v987_v23  ;;  %v1295_v50 = vrot.slane %v2433_v4, %v932_v53 }
 0x3c5   : > { %v1009_v55 = vsel %vm993_vm4, %v1007_v47, 0.0  ;;  %v1067_v56 = vmul.f32 %v2455_v49, %v2455_v49  ;;  %v1068_v58 = vmul.f32 %v2457_v51, %v2457_v51  ;;  %v1008_v59 = vsel %vm993_vm4, %v1006_v54, 0.0  ;;  %1862 = vmatpush3.msra.mxu0 %v1127_v21  ;;  %1876 = vmatprep.mubr.msk.f32.mxu1 %vm782_vm3, %v2473_v27 }
 0x3c6   : > { %v1010_v60 = vadd.f32 %v1009_v55, %v1008_v59  ;;  %1863 = vmatprep.subr.mxu0 %v1126_v31  ;;  %1877 = vmatmul.mubr.msk.f32.vlgmr.msra.gmra.mxu1 %vm782_vm3, %v2476_v32  ;;  %v890_v59 = vadd.f32 %v889_v41, %v2410_v52 }
 0x3c7   : > { %v1069_v61 = vsel %vm1054_vm5, %v1067_v56, 0.0  ;;  %v1070_v62 = vsel %vm1054_vm5, %v1068_v58, 0.0  ;;  %1864 = vmatpush3.msra.mxu0 %v1126_v31  ;;  %v891_v58 = vadd.f32 %v889_v41, %v2414_v57 }
 0x3c8   : > { %v1071_v63 = vadd.f32 %v1070_v62, %v1069_v61  ;;  %v1011_v0 = vrot.slane %v1010_v60, 4 }
 0x3c9   : > { %v951_v6 = vsel %vm782_vm3, %v891_v58, 0.0 }
 0x3ca   : > { %v1072_v1 = vrot.slane %v1071_v63, 4  ;;  %v1012_v2 = vadd.f32 %v1011_v0, %v1010_v60  ;;  %v950_v60 = vsel %vm782_vm3, %v890_v59, 0.0 }
 0x3cb   : > { %v952_v61 = vadd.f32 %v951_v6, %v950_v60 }
 0x3cc   : > { %v1073_v3 = vadd.f32 %v1072_v1, %v1071_v63  ;;  %v1013_v5 = vrot.slane %v1012_v2, 2 }
 0x3cd   : > { %v953_v62 = vrot.slane %v952_v61, 4 }
 0x3ce   : > { %v1074_v7 = vrot.slane %v1073_v3, 2  ;;  %v1014_v8 = vadd.f32 %v1013_v5, %v1012_v2 }
 0x3cf   : > { %v954_v63 = vadd.f32 %v953_v62, %v952_v61 }
 0x3d0   : > { %v1075_v9 = vadd.f32 %v1074_v7, %v1073_v3  ;;  %v1015_v10 = vrot.slane %v1014_v8, 1 }
 0x3d1   : > { %v955_v57 = vrot.slane %v954_v63, 2 }
 0x3d2   : > { %v1076_v11 = vrot.slane %v1075_v9, 1  ;;  %v1016_v12 = vadd.f32 %v1015_v10, %v1014_v8 }
 0x3d3   : > { %v956_v0 = vadd.f32 %v955_v57, %v954_v63 }
 0x3d4   : > { %v1077_v13 = vadd.f32 %v1076_v11, %v1075_v9  ;;  %v1017_v14 = vmul.f32 0.0625, %v1016_v12 }
 0x3d5   : > { %v957_v52 = vrot.slane %v956_v0, 1 }
 0x3d6   : > { %v1078_v15 = vmul.f32 0.0625, %v1077_v13  ;;  %v1018_v16 = vadd.f32 1e-05, %v1017_v14 }
 0x3d7   : > { %v958_v1 = vadd.f32 %v957_v52, %v956_v0 }
 0x3d8   : > { %v1079_v17 = vadd.f32 1e-05, %v1078_v15  ;;  %2014 = vrsqrt.f32 %v1018_v16 }
 0x3d9   : > { %v960_v2 = vmul.f32 0.0625, %v958_v1 }
 0x3da   : > { %2016 = vrsqrt.f32 %v1079_v17 }
 0x3db   : > { %v962_v3 = vsub.f32 %v891_v58, %v960_v2  ;;  %v961_v5 = vsub.f32 %v890_v59, %v960_v2 }
 0x3dd   : > { %v963_v7 = vmul.f32 %v961_v5, %v961_v5  ;;  %v964_v8 = vmul.f32 %v962_v3, %v962_v3 }
 0x3df   : > { %v965_v9 = vsel %vm782_vm3, %v963_v7, 0.0  ;;  %v966_v10 = vsel %vm782_vm3, %v964_v8, 0.0 }
 0x3e0   : > { %v967_v11 = vadd.f32 %v966_v10, %v965_v9 }
 0x3e2   : > { %v968_v12 = vrot.slane %v967_v11, 4 }
 0x3e4   : > { %v969_v13 = vadd.f32 %v968_v12, %v967_v11 }
 0x3e5   : > { %v2015_v30 = vpop.eup %2014 }
 0x3e6   : > { %v1020_v33 = vmul.f32 %v2015_v30, %v1004_v46  ;;  %v1021_v34 = vmul.f32 %v2015_v30, %v1005_v44  ;;  %v970_v14 = vrot.slane %v969_v13, 2 }
 0x3e7   : > { %v2017_v35 = vpop.eup %2016 }
 0x3e8   : > { %v1030_v37 = vmul.f32 %v1028_v18, %v1020_v33  ;;  %v1031_v38 = vmul.f32 %v1028_v18, %v1021_v34  ;;  %v1081_v39 = vmul.f32 %v2017_v35, %v2455_v49  ;;  %v1082_v40 = vmul.f32 %v2017_v35, %v2457_v51 }
 0x3e9   : > { %v971_v15 = vadd.f32 %v970_v14, %v969_v13 }
 0x3ea   : > { %v1040_v43 = vadd.f32 %v1038_v24, %v1030_v37  ;;  %v1041_v44 = vadd.f32 %v1038_v24, %v1031_v38  ;;  %v1091_v45 = vmul.f32 %v1089_v36, %v1081_v39  ;;  %v1092_v46 = vmul.f32 %v1089_v36, %v1082_v40 }
 0x3eb   : > { %v972_v16 = vrot.slane %v971_v15, 1 }
 0x3ec   : > { %v1042_v47 = vmax.f32 %v1040_v43, 0.0  ;;  %v1043_v54 = vmax.f32 %v1041_v44, 0.0  ;;  %v1101_v55 = vadd.f32 %v1099_v42, %v1091_v45  ;;  %v1102_v56 = vadd.f32 %v1099_v42, %v1092_v46 }
 0x3ed   : > { %v973_v17 = vadd.f32 %v972_v16, %v971_v15 }
 0x3ee   : > { %1048 = vrot.lane.b32.xlu1 %v1043_v54, %s2159_s27  ;;  %1046 = vrot.lane.b32.xlu0 %v1042_v47, %s2159_s27  ;;  %v1103_v49 = vmax.f32 %v1101_v55, 0.0  ;;  %v1104_v51 = vmax.f32 %v1102_v56, 0.0  ;;  %s2646_s27 = sld [smem:[#allocation17_spill]] (!%p1802_p1) }
 0x3ef   : > { %v974_v18 = vmul.f32 0.0625, %v973_v17 }
 0x3f1   : > { %v975_v19 = vadd.f32 1e-05, %v974_v18 }
 0x3f2   : > { %1109 = vrot.lane.b32.xlu1 %v1104_v51, %s2158_s16  ;;  %1107 = vrot.lane.b32.xlu0 %v1103_v49, %s2158_s16 }
 0x3f3   : > { %2018 = vrsqrt.f32 %v975_v19 }
 0x400   : > { %v2019_v21 = vpop.eup %2018 }
 0x401   : > { %v977_v24 = vmul.f32 %v2019_v21, %v961_v5  ;;  %v978_v25 = vmul.f32 %v2019_v21, %v962_v3 }
 0x403   : > { %v983_v28 = vmul.f32 %v982_v22, %v977_v24  ;;  %v984_v29 = vmul.f32 %v982_v22, %v978_v25 }
 0x405   : > { %v989_v30 = vadd.f32 %v988_v26, %v983_v28  ;;  %v990_v31 = vadd.f32 %v988_v26, %v984_v29 }
 0x407   : > { %v991_v33 = vmax.f32 %v989_v30, 0.0  ;;  %v992_v34 = vmax.f32 %v990_v31, 0.0 }
 0x460   : > { %v1047_v35 = vpop.permute.xlu0 %1046  ;;  %v1049_v36 = vpop.permute.xlu1 %1048 }
 0x461   : > { %v1052_v37 = vadd.f32 %v1047_v35, %v991_v33  ;;  %v1053_v38 = vadd.f32 %v1049_v36, %v992_v34 }
 0x464   : > { %v1108_v39 = vpop.permute.xlu0 %1107  ;;  %v1110_v40 = vpop.permute.xlu1 %1109 }
 0x465   : > { %v1113_v41 = vadd.f32 %v1108_v39, %v1052_v37  ;;  %v1114_v42 = vadd.f32 %v1110_v40, %v1053_v38 }
 0x467   : > { %1865 = vmatprep.mubr.msk.f32.mxu0 %vm782_vm3, %v1113_v41 }
 0x468   : > { %1866 = vmatmul.mubr.msk.f32.vlgmr.msra.gmra.mxu0 %vm782_vm3, %v1114_v42 }
 0x486   : > { %v1878_v43 = vpop.f32.mrf.mxu1 }
 0x488   : > { %v1283_v46 = vpop.f32.mrf.mxu1 }
 0x528   : > { %v1867_v44 = vpop.f32.mrf.mxu0 }
 0x529   : > { %v1289_v45 = vadd.f32 %v1878_v43, %v1867_v44 }
 0x52a   : > { %v1202_v47 = vpop.f32.mrf.mxu0 }
 0x52b   : > { %v1297_v54 = vadd.f32 %v1295_v50, %v1289_v45  ;;  %v1284_v55 = vadd.f32 %v1283_v46, %v1202_v47 }
 0x52d   : > { %v1801_v56 = vmul.f32 -1.442695, %v1297_v54  ;;  %v1296_v58 = vadd.f32 %v1295_v50, %v1284_v55 }
 0x52f   : > { %2020 = vpow2.f32 %v1801_v56  ;;  %v1800_v59 = vmul.f32 -1.442695, %v1296_v58 }
 0x531   : > { %2022 = vpow2.f32 %v1800_v59 }
 0x53c   : > { %v2021_v49 = vpop.eup %2020 }
 0x53d   : > { %v1305_v51 = vadd.f32 1.0, %v2021_v49 }
 0x53e   : > { %v2023_v6 = vpop.eup %2022 }
 0x53f   : > { %2024 = vrcp.f32 %v1305_v51  ;;  %v1304_v60 = vadd.f32 1.0, %v2023_v6 }
 0x541   : > { %2026 = vrcp.f32 %v1304_v60 }
 0x54c   : > { %v2025_v48 = vpop.eup %2024 }
 0x54d   : > { %v1313_v61 = vsub.f32 1.0, %v2025_v48  ;;  %v1311_v4 = vmul.f32 %v2025_v48, %v1114_v42 }
 0x54e   : > { %v2027_v53 = vpop.eup %2026 }
 0x54f   : > { %v1315_v62 = vmul.f32 %v1313_v61, %v2476_v32  ;;  %v1312_v63 = vsub.f32 1.0, %v2027_v53  ;;  %v1310_v0 = vmul.f32 %v2027_v53, %v1113_v41 }
 0x551   : > { %v1317_v57 = vadd.f32 %v1315_v62, %v1311_v4  ;;  %v1314_v52 = vmul.f32 %v1312_v63, %v2473_v27  ;;  %1323 = sbr.rel (%p1802_p1) target bundleno = 1959 (0x7a7), region = 96 }
 0x553   : > { %1319 = vst.msk [vmem:[#allocation2 + $0x8] sm:$0xff] %vm782_vm3, %v1317_v57  ;;  %v1316_v1 = vadd.f32 %v1314_v52, %v1310_v0 }
 0x555   : > { %1318 = vst.msk [vmem:[#allocation2] sm:$0xff] %vm782_vm3, %v1316_v1 }
 0x556   : > { %v1405_v2 = vld [vmem:[%s2640_s10 + $0x10] sm:$0xf]  ;;  %v2160_v3 = vmov 0.0   ;;  %vm2161_vm7 = vmmov 0   ;;  %vm1410_vm8 = vcmask 1043456   ;;  %v1401_v32 = vld [vmem:[%s2642_s9 + $0x18] sm:$0xff] }
 0x557   : > { %1879 = vmatprep.subr.mxu0 %v2160_v3  ;;  %1883 = vmatprep.mubr.msk.f32.mxu0 %vm2161_vm7, %v2160_v3  ;;  %v1324_v27 = vld [vmem:[%s2641_s14] sm:$0x3]  ;;  %v1404_v5 = vld [vmem:[%s2640_s10 + $0x8] sm:$0xff]  ;;  %v1400_v7 = vld [vmem:[%s2642_s9 + $0x10] sm:$0xff]  ;;  %vm1406_vm9 = vcmask 162816   ;;  %vm1650_vm10 = vcmask 25600  }
 0x558   : > { %1880 = vmatpush3.msra.mxu0 %v1317_v57  ;;  %1886 = vmatprep.subr.mxu1 %v2160_v3  ;;  %v1403_v8 = vld [vmem:[%s2640_s10] sm:$0xff]  ;;  %v1399_v9 = vld [vmem:[%s2642_s9 + $0x8] sm:$0xff]  ;;  %v1569_v16 = vld [vmem:[%s2644_s17 + $0x18] sm:$0xff] }
 0x559   : > { %1881 = vmatprep.subr.mxu0 %v2160_v3  ;;  %1887 = vmatpush3.msk.msra.mxu1 %vm1410_vm8, %v1405_v2  ;;  %v1402_v10 = vld [vmem:[%s2643_s29] sm:$0x3]  ;;  %v1568_v17 = vld [vmem:[%s2645_s21 + $0x10] sm:$0xff]  ;;  %v1567_v18 = vld [vmem:[%s2645_s21 + $0x8] sm:$0xff] }
 0x55a   : > { %1882 = vmatpush3.msra.mxu0 %v1316_v1  ;;  %1888 = vmatprep.subr.mxu1 %v2160_v3  ;;  %v1398_v11 = vld [vmem:[%s2642_s9] sm:$0xff] }
 0x55b   : > { %1884 = vmatmul.mubr.msk.f32.vlgmr.msra.gmra.mxu0 %vm688_vm2, %v1324_v27  ;;  %1895 = vmatprep.subr.mxu0 %v2160_v3  ;;  %v1566_v19 = vld [vmem:[%s2645_s21] sm:$0xff] }
 0x55c   : > { %1896 = vmatpush3.msra.mxu0 %v1401_v32  ;;  %1889 = vmatpush3.msra.mxu1 %v1404_v5  ;;  %v1807_v21 = vld [vmem:[%s2646_s27] ss:$0 sm:$0xff] }
 0x55d   : > { %1897 = vmatprep.subr.mxu0 %v2160_v3  ;;  %1890 = vmatprep.subr.mxu1 %v2160_v3  ;;  %v1808_v26 = vld [vmem:[%s2647_s3] ss:$0 sm:$0xff] }
 0x55e   : > { %1898 = vmatpush3.msra.mxu0 %v1400_v7  ;;  %1891 = vmatpush3.msra.mxu1 %v1403_v8 }
 0x55f   : > { %1899 = vmatprep.subr.mxu0 %v2160_v3  ;;  %1892 = vmatprep.mubr.msk.f32.mxu1 %vm2161_vm7, %v2160_v3 }
 0x560   : > { %1900 = vmatpush3.msra.mxu0 %v1399_v9  ;;  %1893 = vmatmul.mubr.msk.f32.vlgmr.msra.gmra.mxu1 %vm1406_vm9, %v1402_v10 }
 0x561   : > { %1901 = vmatprep.subr.mxu0 %v2160_v3  ;;  %1903 = vmatprep.mubr.msk.f32.mxu0 %vm2161_vm7, %v2160_v3 }
 0x562   : > { %1906 = vmatprep.subr.mxu1 %v2160_v3  ;;  %1914 = vmatprep.mubr.msk.f32.mxu1 %vm2161_vm7, %v2160_v3 }
 0x563   : > { %1902 = vmatpush3.msra.mxu0 %v1398_v11  ;;  %1907 = vmatpush3.msra.mxu1 %v1569_v16 }
 0x564   : > { %1908 = vmatprep.subr.mxu1 %v2160_v3 }
 0x565   : > { %1909 = vmatpush3.msra.mxu1 %v1568_v17 }
 0x566   : > { %1910 = vmatprep.subr.mxu1 %v2160_v3 }
 0x567   : > { %1911 = vmatpush3.msra.mxu1 %v1567_v18 }
 0x568   : > { %1912 = vmatprep.subr.mxu1 %v2160_v3 }
 0x569   : > { %1913 = vmatpush3.msra.mxu1 %v1566_v19 }
 0x61b   : > { %v1394_v12 = vpop.f32.mrf.mxu0 }
 0x61c   : > { %1904 = vmatmul.mubr.msk.f32.vlgmr.msra.gmra.mxu0 %vm782_vm3, %v1394_v12 }
 0x61d   : > { %v1885_v13 = vpop.f32.mrf.mxu0 }
 0x620   : > { %v1480_v14 = vpop.f32.mrf.mxu1 }
 0x622   : > { %v1894_v15 = vpop.f32.mrf.mxu1 }
 0x6dc   : > { %v1553_v20 = vpop.f32.mrf.mxu0 }
 0x6dd   : > { %v1554_v22 = vadd.f32 %v1553_v20, %v1480_v14 }
 0x6de   : > { %v1905_v23 = vpop.f32.mrf.mxu0 }
 0x6df   : > { %v1564_v24 = vadd.f32 %v1807_v21, %v1554_v22 }
 0x6e1   : > { %v1565_v25 = vmax.f32 %v1564_v24, 0.0 }
 0x6e3   : > { %1915 = vmatmul.mubr.msk.f32.vlgmr.msra.gmra.mxu1 %vm782_vm3, %v1565_v25 }
 0x7a3   : > { %v1646_v28 = vpop.f32.mrf.mxu1 }
 0x7a4   : > { %v1647_v29 = vadd.f32 %v1808_v26, %v1646_v28 }
 0x7a5   : > { %v1916_v30 = vpop.f32.mrf.mxu1 }
 0x7a6   : > { %1651 = vst.msk [vmem:[#allocation7] sm:$0x3] %vm1650_vm10, %v1647_v29 }
 0x7a7 PF: > { %s2648_s12 = sadd.s32 4294967295, %s2150_s20   ;;  %s2162_s14 = smov [#allocation7]  }
 0x7a8   : > { %p2565_p2 = scmp.eq.s32.totalorder %s2648_s12, 14  ;;  %s1659_s17 = sshll.u32 %s2162_s14, 4  ;;  %s1660_s17 = int_to_ptr.vmem [resolvable:$true] %s1659_s17 }
 0x7a9   : > { %s2056_s24 = scalar_lea.vmem %s1660_s17, 32  ;;  %p2063_p6 = scmp.lt.s32.totalorder %s1660_s17, %s1660_s17 }
 0x7aa   : > { %p2057_p3 = scmp.ne.s32.totalorder %s1660_s17, %s2056_s24  ;;  %p2064_p8 = scmp.lt.s32.totalorder %s2056_s24, %s2056_s24 }
 0x7ac   : > { %p2058_p4 = pnand %p2057_p3, %p2565_p2  ;;  %p2065_p9 = por %p2064_p8, %p2063_p6 }
 0x7ae   : > { %p2059_p5 = pneg %p2058_p4 }
 0x7b0   : > { %p2066_p10 = pnand %p2065_p9, %p2059_p5 }
 0x7b2   : > { %2069 = shalt.err (!%p2066_p10)
}
 0x7b3   : > { %s2650_s6 = sld [smem:[#allocation20_spill]] }
 0x7b9   : > { %1929 = dma.vmem_to_hbm [thread:$0]  (%p2565_p2), %s1660_s17, 32, %s2650_s6, [#allocation6]  }
 0x7ba   : > { %2117 = dma.done.wait (%p2565_p2), [#allocation6], 32  }
 0x7bb   : > { %2119 = vsyncadd (%p2565_p2), [#allocation6], 4294967264 }
 0x7bc PF: > { %s28_s20 = sadd.s32 1, %s2150_s20   ;;  %s2651_s23 = sld [smem:[#allocation10_spill]] }
 0x7bd   : > { %p25_p11 = scmp.ge.s32.totalorder %s28_s20, 17   ;;  %s2652_s25 = sld [smem:[#allocation11_spill]] }
 0x7be   : > { %s2653_s29 = smov %s2126_s30  ;;  %s2654_s30 = smov %s2130_s15 }
 0x7bf   : > { %s2655_s15 = smov %s2307_s11  ;;  %s2656_s16 = smov %s2142_s18 }
 0x7c0   : > { %s2657_s17 = smov %s2146_s19  ;;  %27 = sbr.rel (!%p25_p11) target bundleno = 16 (0x10), region = 141 }
 0x7c2   : > { %s2658_s18 = smov %s2651_s23 }
 0x7c3   : > { %s2659_s19 = smov %s2652_s25 }
 0x7c5   :  { %1672 = vsyncpa [#allocation5], 1 }
 0x7c6   :  { %1674 = vsyncpa [#allocation5 + $0x1], 1 }
 0x7c7   :  { %1675 = vsyncpa [#allocation6], 1 }
 0x7c8   :  { %1677 = vsyncpa [#allocation6 + $0x1], 1 }

</bundles_post_ra>
